<compile_context>
chip_gen: v7x
topology: tpu7x:2x2x1
jax: 0.10.0
libtpu: 0.0.40
codegen_flags: <defaults>
</compile_context>

<pallas_src>
import functools

import jax
import jax.numpy as jnp
from jax.experimental import pallas as pl
from jax.experimental.pallas import tpu as pltpu


# ------------------------------ fused kernel ------------------------------- #
def _contrastive_loss_kernel(o1_ref, o2_ref, lbl_ref, loss_ref, *,
                             margin, eps, n_rows, block_b, steps_per_split,
                             need_mask):
    c = pl.program_id(0)          # core / split index ("parallel")
    i = pl.program_id(1)          # batch-tile index   ("arbitrary", reduction)

    # This split's (1,1) output block is resident across the i axis -> init once.
    @pl.when(i == 0)
    def _():
        loss_ref[...] = jnp.zeros_like(loss_ref)

    # Upcast in-register (inputs stream from HBM in their native dtype).
    o1 = o1_ref[...].astype(jnp.float32)                        # [tb, D]
    o2 = o2_ref[...].astype(jnp.float32)                        # [tb, D]
    diff = o1 - o2 + eps                                        # VPU
    sq_dist = jnp.sum(diff * diff, axis=-1, keepdims=True)      # [tb, 1] lane reduce
    dist = jnp.sqrt(sq_dist)                                    # EUP
    lbl = lbl_ref[...].astype(jnp.float32)                      # [tb, 1]
    hinge = jnp.maximum(margin - dist, 0.0)                     # clamp(margin - d, 0)
    per = (1.0 - lbl) * sq_dist + lbl * (hinge * hinge)         # [tb, 1]

    if need_mask:  # static: only emitted when the last tile is ragged
        row = (c * steps_per_split + i) * block_b + \
            jax.lax.broadcasted_iota(jnp.int32, per.shape, 0)
        per = jnp.where(row < n_rows, per, 0.0)   # select (not multiply): NaN-safe

    loss_ref[...] += jnp.sum(per, axis=0, keepdims=True)        # (1,1) accumulate

    # Finalize this split's partial mean contribution.
    @pl.when(i == pl.num_programs(1) - 1)
    def _():
        loss_ref[...] = loss_ref[...] * (1.0 / n_rows)


# ------------------------------ helpers ------------------------------------ #
def _is_v7x():
    try:
        kind = jax.devices()[0].device_kind.lower()
        return ("v7" in kind) or ("7x" in kind)
    except Exception:
        return False


# --------------------------------- wrapper --------------------------------- #
def contrastive_loss(output1, output2, label, margin=2.0, eps=1e-6, block_b=None):
    output1 = jnp.asarray(output1)
    output2 = jnp.asarray(output2)
    if not jnp.issubdtype(output1.dtype, jnp.floating):
        output1 = output1.astype(jnp.float32)
    if not jnp.issubdtype(output2.dtype, jnp.floating):
        output2 = output2.astype(jnp.float32)

    b, d = output1.shape
    label = jnp.asarray(label, jnp.float32).reshape(b, 1)
    margin = float(margin)
    eps = float(eps)

    # Tiny batches: launch + pipeline-prime cost dominates -> plain jnp.
    if b < 128:
        diff = output1.astype(jnp.float32) - output2.astype(jnp.float32) + eps
        dist = jnp.sqrt(jnp.sum(diff * diff, axis=-1, keepdims=True))
        return jnp.mean((1.0 - label) * dist * dist
                        + label * jnp.maximum(margin - dist, 0.0) ** 2)

    # ---- tile sizing from a VMEM budget (safe under every gen's scoped default)
    i1, i2 = output1.dtype.itemsize, output2.dtype.itemsize
    sub = 16 if min(i1, i2) < 4 else 8          # sublane multiple (16 for bf16/f16)
    if block_b is None:
        VMEM_BUDGET = 12 * 1024 * 1024          # < 16 MiB v5e scoped default
        bytes_per_row = 2 * d * (i1 + i2) + 2 * 4   # 2 pipeline bufs x inputs + label
        cap = max(sub, (VMEM_BUDGET // bytes_per_row) // sub * sub)
        block_b = min(2048, cap)
    else:
        block_b = max(sub, (int(block_b) // sub) * sub)
    if block_b >= b:
        block_b = b                              # full-batch block (always legal)

    total_blocks = pl.cdiv(b, block_b)
    need_mask = (b % block_b) != 0
    # v7x: split the reduction across the 2 TensorCores (one partial per core).
    num_splits = 2 if (_is_v7x() and total_blocks >= 2 and total_blocks % 2 == 0) else 1
    steps = total_blocks // num_splits

    kernel = functools.partial(
        _contrastive_loss_kernel,
        margin=margin, eps=eps, n_rows=b, block_b=block_b,
        steps_per_split=steps, need_mask=need_mask)

    def row_map(c, i):
        return (c * steps + i, 0)

    partials = pl.pallas_call(
        kernel,
        out_shape=jax.ShapeDtypeStruct((num_splits, 1), jnp.float32),
        grid=(num_splits, steps),
        in_specs=[
            pl.BlockSpec((block_b, d), row_map),
            pl.BlockSpec((block_b, d), row_map),
            pl.BlockSpec((block_b, 1), row_map),
        ],
        # One VMEM-resident (1,1) accumulator block per split.
        out_specs=pl.BlockSpec((1, 1), lambda c, i: (c, 0)),
        compiler_params=pltpu.CompilerParams(
            dimension_semantics=("parallel", "arbitrary")),
    )(output1, output2, label)

    return jnp.sum(partials)


# ------------------------------ reference ---------------------------------- #
def _reference(o1, o2, lbl, margin=2.0, eps=1e-6):
    o1 = jnp.asarray(o1).astype(jnp.float32)
    o2 = jnp.asarray(o2).astype(jnp.float32)
    lbl = jnp.asarray(lbl, jnp.float32).reshape(o1.shape[0], 1)
    diff = o1 - o2 + eps
    dist = jnp.sqrt(jnp.sum(diff * diff, axis=-1, keepdims=True))
    return jnp.mean((1.0 - lbl) * dist ** 2
                    + lbl * jnp.maximum(margin - dist, 0.0) ** 2)


# ----------------------------------- main ----------------------------------- #
if __name__ == "__main__":
    key = jax.random.PRNGKey(0)
    MARGIN = 2.0

    # Case 1: tiny batch -> jnp fallback path.
    k1, k2, k3, key = *jax.random.split(key, 3), jax.random.split(key, 4)[3]
    o1 = jax.random.normal(k1, (8, 128), jnp.float32)
    o2 = jax.random.normal(k2, (8, 128), jnp.float32)
    lbl = (jax.random.uniform(k3, (8, 1)) < 0.5).astype(jnp.float32)
    loss = contrastive_loss(o1, o2, lbl, margin=MARGIN)
    jax.block_until_ready(loss)
    assert loss.shape == () and jnp.allclose(loss, _reference(o1, o2, lbl, MARGIN),
                                             rtol=1e-5, atol=1e-5)

    # Case 2: kernel path, f32, full-batch block (single grid step).
    k1, k2, k3, key = jax.random.split(key, 4)
    o1 = jax.random.normal(k1, (512, 128), jnp.float32)
    o2 = jax.random.normal(k2, (512, 128), jnp.float32)
    lbl = (jax.random.uniform(k3, (512, 1)) < 0.5).astype(jnp.float32)
    loss = contrastive_loss(o1, o2, lbl, margin=MARGIN)
    jax.block_until_ready(loss)
    assert loss.shape == () and loss.dtype == jnp.float32
    assert jnp.allclose(loss, _reference(o1, o2, lbl, MARGIN), rtol=1e-5, atol=1e-5)

    # Case 3: kernel path, bf16 inputs (in-kernel upcast), ragged tail + masking,
    #         multi-step accumulation (explicit 128-row tiles over 600 rows).
    k1, k2, k3 = jax.random.split(key, 3)
    o1 = jax.random.normal(k1, (600, 64), jnp.float32).astype(jnp.bfloat16)
    o2 = jax.random.normal(k2, (600, 64), jnp.float32).astype(jnp.bfloat16)
    lbl = (jax.random.uniform(k3, (600,)) < 0.5).astype(jnp.float32)
    loss = contrastive_loss(o1, o2, lbl, margin=MARGIN, block_b=128)
    jax.block_until_ready(loss)
    assert jnp.allclose(loss, _reference(o1, o2, lbl, MARGIN), rtol=1e-4, atol=1e-4)

    print("KERNEL_OK")
</pallas_src>

<mosaic_0001>
module attributes {stable_mosaic.version = 11 : i64} {
  func.func @_contrastive_loss_kernel(%arg0: i32, %arg1: i32, %arg2: memref<512x128xf32, #tpu.memory_space<vmem>>, %arg3: memref<512x128xf32, #tpu.memory_space<vmem>>, %arg4: memref<512x1xf32, #tpu.memory_space<vmem>>, %arg5: memref<1x1xf32, #tpu.memory_space<vmem>>) attributes {dimension_semantics = [#tpu.dimension_semantics<parallel>, #tpu.dimension_semantics<arbitrary>], iteration_bounds = array<i64: 1, 1>, scalar_prefetch = 0 : i64, scratch_operands = 0 : i64, tpu.core_type = #tpu.core_type<tc>, window_params = [{transform_indices = @transform_0, window_bounds = array<i64: 512, 128>}, {transform_indices = @transform_1, window_bounds = array<i64: 512, 128>}, {transform_indices = @transform_2, window_bounds = array<i64: 512, 1>}, {transform_indices = @transform_3, window_bounds = array<i64: 1, 1>}]} {
    %c0_i32 = arith.constant 0 : i32
    %0 = arith.cmpi eq, %arg1, %c0_i32 : i32
    %1 = arith.extui %0 : i1 to i32
    %c0_i32_0 = arith.constant 0 : i32
    %2 = arith.cmpi ne, %1, %c0_i32_0 : i32
    scf.if %2 {
      %cst_17 = arith.constant 0.000000e+00 : f32
      %31 = vector.broadcast %cst_17 : f32 to vector<1x1xf32>
      %c0_18 = arith.constant 0 : index
      %c0_19 = arith.constant 0 : index
      %32 = vector.load %arg5[%c0_18, %c0_19] : memref<1x1xf32, #tpu.memory_space<vmem>>, vector<1x1xf32>
      tpu.vector_store %arg5[%c0_18, %c0_19], %31 {strides = array<i32>} : memref<1x1xf32, #tpu.memory_space<vmem>>, vector<1x1xf32>,
    } else {
    }
    %c0 = arith.constant 0 : index
    %c0_1 = arith.constant 0 : index
    %3 = vector.load %arg2[%c0, %c0_1] : memref<512x128xf32, #tpu.memory_space<vmem>>, vector<512x128xf32>
    %c0_2 = arith.constant 0 : index
    %c0_3 = arith.constant 0 : index
    %4 = vector.load %arg3[%c0_2, %c0_3] : memref<512x128xf32, #tpu.memory_space<vmem>>, vector<512x128xf32>
    %5 = arith.subf %3, %4 : vector<512x128xf32>
    %cst = arith.constant 9.99999997E-7 : f32
    %6 = vector.broadcast %cst : f32 to vector<512x128xf32>
    %7 = arith.addf %5, %6 : vector<512x128xf32>
    %8 = arith.mulf %7, %7 : vector<512x128xf32>
    %cst_4 = arith.constant dense<0.000000e+00> : vector<512xf32>
    %9 = vector.multi_reduction <add>, %8, %cst_4 [1] : vector<512x128xf32> to vector<512xf32>
    %10 = vector.shape_cast %9 : vector<512xf32> to vector<512x1xf32>
    %11 = math.sqrt %10 : vector<512x1xf32>
    %c0_5 = arith.constant 0 : index
    %c0_6 = arith.constant 0 : index
    %12 = vector.load %arg4[%c0_5, %c0_6] : memref<512x1xf32, #tpu.memory_space<vmem>>, vector<512x1xf32>
    %cst_7 = arith.constant 2.000000e+00 : f32
    %13 = vector.broadcast %cst_7 : f32 to vector<512x1xf32>
    %14 = arith.subf %13, %11 : vector<512x1xf32>
    %cst_8 = arith.constant 0.000000e+00 : f32
    %15 = vector.broadcast %cst_8 : f32 to vector<512x1xf32>
    %16 = arith.maximumf %14, %15 : vector<512x1xf32>
    %cst_9 = arith.constant 1.000000e+00 : f32
    %17 = vector.broadcast %cst_9 : f32 to vector<512x1xf32>
    %18 = arith.subf %17, %12 : vector<512x1xf32>
    %19 = arith.mulf %18, %10 : vector<512x1xf32>
    %20 = arith.mulf %16, %16 : vector<512x1xf32>
    %21 = arith.mulf %12, %20 : vector<512x1xf32>
    %22 = arith.addf %19, %21 : vector<512x1xf32>
    %c0_10 = arith.constant 0 : index
    %c0_11 = arith.constant 0 : index
    %23 = vector.load %arg5[%c0_10, %c0_11] : memref<1x1xf32, #tpu.memory_space<vmem>>, vector<1x1xf32>
    %cst_12 = arith.constant dense<0.000000e+00> : vector<1xf32>
    %24 = vector.multi_reduction <add>, %22, %cst_12 [0] : vector<512x1xf32> to vector<1xf32>
    %25 = vector.shape_cast %24 : vector<1xf32> to vector<1x1xf32>
    %26 = arith.addf %23, %25 : vector<1x1xf32>
    %c0_13 = arith.constant 0 : index
    %c0_14 = arith.constant 0 : index
    %27 = vector.load %arg5[%c0_13, %c0_14] : memref<1x1xf32, #tpu.memory_space<vmem>>, vector<1x1xf32>
    tpu.vector_store %arg5[%c0_13, %c0_14], %26 {strides = array<i32>} : memref<1x1xf32, #tpu.memory_space<vmem>>, vector<1x1xf32>,
    %c0_i32_15 = arith.constant 0 : i32
    %28 = arith.cmpi eq, %arg1, %c0_i32_15 : i32
    %29 = arith.extui %28 : i1 to i32
    %c0_i32_16 = arith.constant 0 : i32
    %30 = arith.cmpi ne, %29, %c0_i32_16 : i32
    scf.if %30 {
      %c0_17 = arith.constant 0 : index
      %c0_18 = arith.constant 0 : index
      %31 = vector.load %arg5[%c0_17, %c0_18] : memref<1x1xf32, #tpu.memory_space<vmem>>, vector<1x1xf32>
      %cst_19 = arith.constant 0.001953125 : f32
      %32 = vector.broadcast %cst_19 : f32 to vector<1x1xf32>
      %33 = arith.mulf %31, %32 : vector<1x1xf32>
      %c0_20 = arith.constant 0 : index
      %c0_21 = arith.constant 0 : index
      %34 = vector.load %arg5[%c0_20, %c0_21] : memref<1x1xf32, #tpu.memory_space<vmem>>, vector<1x1xf32>
      tpu.vector_store %arg5[%c0_20, %c0_21], %33 {strides = array<i32>} : memref<1x1xf32, #tpu.memory_space<vmem>>, vector<1x1xf32>,
    } else {
    }
    return
  }
  func.func @transform_0(%arg0: i32, %arg1: i32) -> (i32, i32) {
    %c1_i32 = arith.constant 1 : i32
    %0 = arith.muli %arg0, %c1_i32 : i32
    %1 = arith.addi %0, %arg1 : i32
    %c0_i32 = arith.constant 0 : i32
    %c0_i32_0 = arith.constant 0 : i32
    return %1, %c0_i32 : i32, i32
  }
  func.func @transform_1(%arg0: i32, %arg1: i32) -> (i32, i32) {
    %c1_i32 = arith.constant 1 : i32
    %0 = arith.muli %arg0, %c1_i32 : i32
    %1 = arith.addi %0, %arg1 : i32
    %c0_i32 = arith.constant 0 : i32
    %c0_i32_0 = arith.constant 0 : i32
    return %1, %c0_i32 : i32, i32
  }
  func.func @transform_2(%arg0: i32, %arg1: i32) -> (i32, i32) {
    %c1_i32 = arith.constant 1 : i32
    %0 = arith.muli %arg0, %c1_i32 : i32
    %1 = arith.addi %0, %arg1 : i32
    %c0_i32 = arith.constant 0 : i32
    %c0_i32_0 = arith.constant 0 : i32
    return %1, %c0_i32 : i32, i32
  }
  func.func @transform_3(%arg0: i32, %arg1: i32) -> (i32, i32) {
    %c0_i32 = arith.constant 0 : i32
    %c0_i32_0 = arith.constant 0 : i32
    return %arg0, %c0_i32 : i32, i32
  }
}

</mosaic_0001>

<bundles_post_ra>
// kernel: tpu_custom_call.1
= control target key start
LH: loop header
LB: loop body
LE: loop exit
PB: predicated region body
PF: predicated region fallthrough
CT: control target
= control target key end

     0   :  { %8 = vsyncpa [#allocation3], 0  ;;  %s3523_s0 = inlined_call_operand.vmem [shape: f32[512,128], index: 0, kind: input, shape index: {}]   ;;  %s3524_s1 = inlined_call_operand.hbm [shape: f32[512,128], index: 1, kind: input, shape index: {}]   ;;  %s3525_s2 = inlined_call_operand.vmem [shape: f32[512,1], index: 2, kind: input, shape index: {}]   ;;  %s3526_s3 = inlined_call_operand.hbm [shape: f32[1,1], index: 3, kind: output, shape index: {}]  }
   0x1   :  { %9 = vsyncpa [#allocation4], 0  ;;  %s1845_s12 = smov [#allocation2]   ;;  %s1797_s16 = scalar_lea.hbm %s3524_s1, 8192 }
   0x2   :  { %s29_s13 = sshll.u32 %s1845_s12, 4  ;;  %p1798_p0 = scmp.ne.s32.totalorder %s3524_s1, %s1797_s16  ;;  %s30_s13 = int_to_ptr.vmem [resolvable:$true] %s29_s13 }
   0x3   :  { %p1801_p1 = scmp.lt.u32.totalorder %s1797_s16, %s3524_s1 }
   0x5   :  { %p1803_p2 = pnand %p1801_p1, %p1798_p0 }
   0x7   :  { %1806 = shalt.err (!%p1803_p2)
}
   0x8   :  { %s1807_s21 = scalar_lea.vmem %s30_s13, 8192  ;;  %p1812_p4 = scmp.lt.s32.totalorder %s30_s13, %s30_s13 }
   0x9   :  { %p1808_p3 = scmp.ne.s32.totalorder %s30_s13, %s1807_s21  ;;  %p1813_p5 = scmp.lt.s32.totalorder %s1807_s21, %s1807_s21 }
   0xb   :  { %p1814_p6 = por %p1813_p5, %p1812_p4 }
   0xd   :  { %p1815_p7 = pnand %p1814_p6, %p1808_p3 }
   0xf   :  { %1818 = shalt.err (!%p1815_p7)
}
  0x10   :  { %s1846_s22 = smov 128   ;;  %s1847_s23 = smov 8  }
  0x11   :  { %35 = dma.hbm_to_vmem [thread:$0]  %s3524_s1, 8192, %s30_s13, [#allocation3], %s1846_s22, %s1846_s22, %s1847_s23  }
  0x12   :  { %1841 = dma.done.wait [#allocation3], 8192  }
  0x13   :  { %1842 = vsyncadd [#allocation3], 4294959104  ;;  %v87_v0 = vld [vmem:[%s3523_s0 + $0x10] sm:$0xff]  ;;  %v85_v2 = vld [vmem:[%s3523_s0] sm:$0xff]  ;;  %vm1494_vm13 = vcmask 7168  }
  0x14   :  { %v151_v1 = vld [vmem:[#allocation2 + $0x10] sm:$0xff]  ;;  %v149_v4 = vld [vmem:[#allocation2] sm:$0xff]  ;;  %v88_v5 = vld [vmem:[%s3523_s0 + $0x18] sm:$0xff] }
  0x15   :  { %v215_v3 = vsub.f32 %v87_v0, %v151_v1  ;;  %v152_v6 = vld [vmem:[#allocation2 + $0x18] sm:$0xff]  ;;  %v213_v7 = vsub.f32 %v85_v2, %v149_v4  ;;  %v86_v9 = vld [vmem:[%s3523_s0 + $0x8] sm:$0xff]  ;;  %v89_v15 = vld [vmem:[%s3523_s0 + $0x20] sm:$0xff] }
  0x16   :  { %v216_v8 = vsub.f32 %v88_v5, %v152_v6  ;;  %v150_v10 = vld [vmem:[#allocation2 + $0x8] sm:$0xff]  ;;  %v153_v16 = vld [vmem:[#allocation2 + $0x20] sm:$0xff]  ;;  %v92_v21 = vld [vmem:[%s3523_s0 + $0x38] sm:$0xff] }
  0x17   :  { %v90_v11 = vld [vmem:[%s3523_s0 + $0x28] sm:$0xff]  ;;  %v279_v12 = vadd.f32 1e-06, %v215_v3  ;;  %v214_v13 = vsub.f32 %v86_v9, %v150_v10  ;;  %v277_v17 = vadd.f32 1e-06, %v213_v7  ;;  %v217_v20 = vsub.f32 %v89_v15, %v153_v16  ;;  %v156_v22 = vld [vmem:[#allocation2 + $0x38] sm:$0xff] }
  0x18   :  { %v154_v14 = vld [vmem:[#allocation2 + $0x28] sm:$0xff]  ;;  %v280_v18 = vadd.f32 1e-06, %v216_v8  ;;  %v91_v25 = vld [vmem:[%s3523_s0 + $0x30] sm:$0xff]  ;;  %v220_v30 = vsub.f32 %v92_v21, %v156_v22  ;;  %v93_v36 = vld [vmem:[%s3523_s0 + $0x40] sm:$0xff] }
  0x19   :  { %v218_v19 = vsub.f32 %v90_v11, %v154_v14  ;;  %v343_v23 = vmul.f32 %v279_v12, %v279_v12  ;;  %v278_v24 = vadd.f32 1e-06, %v214_v13  ;;  %v155_v26 = vld [vmem:[#allocation2 + $0x30] sm:$0xff]  ;;  %v341_v27 = vmul.f32 %v277_v17, %v277_v17  ;;  %v94_v34 = vld [vmem:[%s3523_s0 + $0x48] sm:$0xff]  ;;  %v157_v37 = vld [vmem:[#allocation2 + $0x40] sm:$0xff] }
  0x1a   :  { %v344_v28 = vmul.f32 %v280_v18, %v280_v18  ;;  %v281_v32 = vadd.f32 1e-06, %v217_v20  ;;  %v219_v33 = vsub.f32 %v91_v25, %v155_v26  ;;  %v158_v35 = vld [vmem:[#allocation2 + $0x48] sm:$0xff]  ;;  %v284_v39 = vadd.f32 1e-06, %v220_v30  ;;  %v96_v44 = vld [vmem:[%s3523_s0 + $0x58] sm:$0xff] }
  0x1b   :  { %409 = vadd.xlane.f32.xlu1 %v343_v23  ;;  %v282_v29 = vadd.f32 1e-06, %v218_v19  ;;  %405 = vadd.xlane.f32.xlu0 %v341_v27  ;;  %v342_v31 = vmul.f32 %v278_v24, %v278_v24  ;;  %v222_v40 = vsub.f32 %v94_v34, %v158_v35  ;;  %v221_v43 = vsub.f32 %v93_v36, %v157_v37  ;;  %v160_v45 = vld [vmem:[#allocation2 + $0x58] sm:$0xff]  ;;  %v95_v46 = vld [vmem:[%s3523_s0 + $0x50] sm:$0xff]  ;;  %v98_v54 = vld [vmem:[%s3523_s0 + $0x68] sm:$0xff] }
  0x1c   :  { %v345_v41 = vmul.f32 %v281_v32, %v281_v32  ;;  %v283_v42 = vadd.f32 1e-06, %v219_v33  ;;  %v159_v47 = vld [vmem:[#allocation2 + $0x50] sm:$0xff]  ;;  %v348_v48 = vmul.f32 %v284_v39, %v284_v39  ;;  %v224_v50 = vsub.f32 %v96_v44, %v160_v45  ;;  %v162_v55 = vld [vmem:[#allocation2 + $0x68] sm:$0xff]  ;;  %v97_v56 = vld [vmem:[%s3523_s0 + $0x60] sm:$0xff] }
  0x1d   :  { %v346_v38 = vmul.f32 %v282_v29, %v282_v29  ;;  %v286_v49 = vadd.f32 1e-06, %v222_v40  ;;  %v285_v52 = vadd.f32 1e-06, %v221_v43  ;;  %v223_v53 = vsub.f32 %v95_v46, %v159_v47  ;;  %v161_v57 = vld [vmem:[#allocation2 + $0x60] sm:$0xff]  ;;  %v100_v0 = vld [vmem:[%s3523_s0 + $0x78] sm:$0xff] }
  0x1e   :  { %v347_v51 = vmul.f32 %v283_v42, %v283_v42  ;;  %v288_v59 = vadd.f32 1e-06, %v224_v50  ;;  %v226_v60 = vsub.f32 %v98_v54, %v162_v55  ;;  %v225_v63 = vsub.f32 %v97_v56, %v161_v57  ;;  %v164_v1 = vld [vmem:[#allocation2 + $0x78] sm:$0xff]  ;;  %v99_v2 = vld [vmem:[%s3523_s0 + $0x70] sm:$0xff]  ;;  %v102_v10 = vld [vmem:[%s3523_s0 + $0x88] sm:$0xff] }
  0x1f   :  { %411 = vadd.xlane.f32.xlu1 %v344_v28  ;;  %407 = vadd.xlane.f32.xlu0 %v342_v31  ;;  %v350_v58 = vmul.f32 %v286_v49, %v286_v49  ;;  %v349_v61 = vmul.f32 %v285_v52, %v285_v52  ;;  %v287_v62 = vadd.f32 1e-06, %v223_v53  ;;  %v163_v3 = vld [vmem:[#allocation2 + $0x70] sm:$0xff]  ;;  %v228_v6 = vsub.f32 %v100_v0, %v164_v1  ;;  %v166_v11 = vld [vmem:[#allocation2 + $0x88] sm:$0xff]  ;;  %v101_v12 = vld [vmem:[%s3523_s0 + $0x80] sm:$0xff] }
  0x20   :  { %v352_v4 = vmul.f32 %v288_v59, %v288_v59  ;;  %v290_v5 = vadd.f32 1e-06, %v226_v60  ;;  %v289_v8 = vadd.f32 1e-06, %v225_v63  ;;  %v227_v9 = vsub.f32 %v99_v2, %v163_v3  ;;  %v165_v13 = vld [vmem:[#allocation2 + $0x80] sm:$0xff]  ;;  %v104_v20 = vld [vmem:[%s3523_s0 + $0x98] sm:$0xff] }
  0x21   :  { %v351_v7 = vmul.f32 %v287_v62, %v287_v62  ;;  %v292_v15 = vadd.f32 1e-06, %v228_v6  ;;  %v230_v16 = vsub.f32 %v102_v10, %v166_v11  ;;  %v229_v19 = vsub.f32 %v101_v12, %v165_v13  ;;  %v168_v21 = vld [vmem:[#allocation2 + $0x98] sm:$0xff]  ;;  %v103_v22 = vld [vmem:[%s3523_s0 + $0x90] sm:$0xff]  ;;  %v106_v30 = vld [vmem:[%s3523_s0 + $0xa8] sm:$0xff] }
  0x22   :  { %v354_v14 = vmul.f32 %v290_v5, %v290_v5  ;;  %v353_v17 = vmul.f32 %v289_v8, %v289_v8  ;;  %v291_v18 = vadd.f32 1e-06, %v227_v9  ;;  %v167_v23 = vld [vmem:[#allocation2 + $0x90] sm:$0xff]  ;;  %v232_v26 = vsub.f32 %v104_v20, %v168_v21  ;;  %v170_v31 = vld [vmem:[#allocation2 + $0xa8] sm:$0xff]  ;;  %v105_v32 = vld [vmem:[%s3523_s0 + $0xa0] sm:$0xff] }
  0x23   :  { %415 = vadd.xlane.f32.xlu1 %v346_v38  ;;  %413 = vadd.xlane.f32.xlu0 %v345_v41  ;;  %v356_v24 = vmul.f32 %v292_v15, %v292_v15  ;;  %v294_v25 = vadd.f32 1e-06, %v230_v16  ;;  %v293_v28 = vadd.f32 1e-06, %v229_v19  ;;  %v231_v29 = vsub.f32 %v103_v22, %v167_v23  ;;  %v169_v33 = vld [vmem:[#allocation2 + $0xa0] sm:$0xff]  ;;  %v108_v40 = vld [vmem:[%s3523_s0 + $0xb8] sm:$0xff] }
  0x24   :  { %v355_v27 = vmul.f32 %v291_v18, %v291_v18  ;;  %v296_v35 = vadd.f32 1e-06, %v232_v26  ;;  %v234_v36 = vsub.f32 %v106_v30, %v170_v31  ;;  %v233_v39 = vsub.f32 %v105_v32, %v169_v33  ;;  %v172_v41 = vld [vmem:[#allocation2 + $0xb8] sm:$0xff]  ;;  %v107_v42 = vld [vmem:[%s3523_s0 + $0xb0] sm:$0xff]  ;;  %v110_v50 = vld [vmem:[%s3523_s0 + $0xc8] sm:$0xff] }
  0x25   :  { %v358_v34 = vmul.f32 %v294_v25, %v294_v25  ;;  %v357_v37 = vmul.f32 %v293_v28, %v293_v28  ;;  %v295_v38 = vadd.f32 1e-06, %v231_v29  ;;  %v171_v43 = vld [vmem:[#allocation2 + $0xb0] sm:$0xff]  ;;  %v236_v46 = vsub.f32 %v108_v40, %v172_v41  ;;  %v109_v52 = vld [vmem:[%s3523_s0 + $0xc0] sm:$0xff]  ;;  %v112_v60 = vld [vmem:[%s3523_s0 + $0xd8] sm:$0xff] }
  0x26   :  { %v360_v44 = vmul.f32 %v296_v35, %v296_v35  ;;  %v298_v45 = vadd.f32 1e-06, %v234_v36  ;;  %v235_v49 = vsub.f32 %v107_v42, %v171_v43  ;;  %v173_v53 = vld [vmem:[#allocation2 + $0xc0] sm:$0xff]  ;;  %v111_v62 = vld [vmem:[%s3523_s0 + $0xd0] sm:$0xff]  ;;  %v114_v6 = vld [vmem:[%s3523_s0 + $0xe8] sm:$0xff] }
  0x27   :  { %419 = vadd.xlane.f32.xlu1 %v348_v48  ;;  %417 = vadd.xlane.f32.xlu0 %v347_v51  ;;  %v359_v47 = vmul.f32 %v295_v38, %v295_v38  ;;  %v297_v48 = vadd.f32 1e-06, %v233_v39  ;;  %v174_v51 = vld [vmem:[#allocation2 + $0xc8] sm:$0xff]  ;;  %v300_v55 = vadd.f32 1e-06, %v236_v46  ;;  %v237_v59 = vsub.f32 %v109_v52, %v173_v53  ;;  %v175_v63 = vld [vmem:[#allocation2 + $0xd0] sm:$0xff] }
  0x28   :  { %v362_v54 = vmul.f32 %v298_v45, %v298_v45  ;;  %v238_v56 = vsub.f32 %v110_v50, %v174_v51  ;;  %v239_v5 = vsub.f32 %v111_v62, %v175_v63  ;;  %v113_v8 = vld [vmem:[%s3523_s0 + $0xe0] sm:$0xff]  ;;  %v116_v16 = vld [vmem:[%s3523_s0 + $0xf8] sm:$0xff]  ;;  %v115_v18 = vld [vmem:[%s3523_s0 + $0xf0] sm:$0xff] }
  0x29   :  { %v361_v57 = vmul.f32 %v297_v48, %v297_v48  ;;  %v364_v0 = vmul.f32 %v300_v55, %v300_v55  ;;  %v177_v9 = vld [vmem:[#allocation2 + $0xe0] sm:$0xff]  ;;  %v179_v19 = vld [vmem:[#allocation2 + $0xf0] sm:$0xff]  ;;  %v118_v26 = vld [vmem:[%s3523_s0 + $0x108] sm:$0xff] }
  0x2a   :  { %v302_v1 = vadd.f32 1e-06, %v238_v56  ;;  %v241_v15 = vsub.f32 %v113_v8, %v177_v9  ;;  %v243_v25 = vsub.f32 %v115_v18, %v179_v19  ;;  %v117_v28 = vld [vmem:[%s3523_s0 + $0x100] sm:$0xff]  ;;  %v120_v36 = vld [vmem:[%s3523_s0 + $0x118] sm:$0xff]  ;;  %v119_v38 = vld [vmem:[%s3523_s0 + $0x110] sm:$0xff] }
  0x2b   :  { %423 = vadd.xlane.f32.xlu1 %v350_v58  ;;  %421 = vadd.xlane.f32.xlu0 %v349_v61  ;;  %v299_v58 = vadd.f32 1e-06, %v235_v49  ;;  %v176_v61 = vld [vmem:[#allocation2 + $0xd8] sm:$0xff]  ;;  %v181_v29 = vld [vmem:[#allocation2 + $0x100] sm:$0xff]  ;;  %v183_v39 = vld [vmem:[#allocation2 + $0x110] sm:$0xff] }
  0x2c   :  { %v240_v2 = vsub.f32 %v112_v60, %v176_v61  ;;  %v366_v10 = vmul.f32 %v302_v1, %v302_v1  ;;  %v245_v35 = vsub.f32 %v117_v28, %v181_v29  ;;  %v247_v45 = vsub.f32 %v119_v38, %v183_v39  ;;  %v122_v46 = vld [vmem:[%s3523_s0 + $0x128] sm:$0xff]  ;;  %v121_v48 = vld [vmem:[%s3523_s0 + $0x120] sm:$0xff]  ;;  %v124_v56 = vld [vmem:[%s3523_s0 + $0x138] sm:$0xff] }
  0x2d   :  { %v363_v3 = vmul.f32 %v299_v58, %v299_v58  ;;  %v185_v49 = vld [vmem:[#allocation2 + $0x120] sm:$0xff]  ;;  %v123_v58 = vld [vmem:[%s3523_s0 + $0x130] sm:$0xff] }
  0x2e   :  { %v304_v11 = vadd.f32 1e-06, %v240_v2  ;;  %v249_v55 = vsub.f32 %v121_v48, %v185_v49  ;;  %v126_v2 = vld [vmem:[%s3523_s0 + $0x148] sm:$0xff] }
  0x2f   :  { %427 = vadd.xlane.f32.xlu1 %v352_v4  ;;  %425 = vadd.xlane.f32.xlu0 %v351_v7  ;;  %v301_v4 = vadd.f32 1e-06, %v237_v59  ;;  %v178_v7 = vld [vmem:[#allocation2 + $0xe8] sm:$0xff]  ;;  %v187_v59 = vld [vmem:[#allocation2 + $0x130] sm:$0xff] }
  0x30   :  { %v242_v12 = vsub.f32 %v114_v6, %v178_v7  ;;  %v368_v20 = vmul.f32 %v304_v11, %v304_v11  ;;  %v251_v1 = vsub.f32 %v123_v58, %v187_v59 }
  0x31   :  { %v365_v13 = vmul.f32 %v301_v4, %v301_v4  ;;  %v125_v4 = vld [vmem:[%s3523_s0 + $0x140] sm:$0xff] }
  0x32   :  { %v306_v21 = vadd.f32 1e-06, %v242_v12  ;;  %v128_v12 = vld [vmem:[%s3523_s0 + $0x158] sm:$0xff] }
  0x33   :  { %431 = vadd.xlane.f32.xlu1 %v354_v14  ;;  %429 = vadd.xlane.f32.xlu0 %v353_v17  ;;  %v303_v14 = vadd.f32 1e-06, %v239_v5  ;;  %v180_v17 = vld [vmem:[#allocation2 + $0xf8] sm:$0xff]  ;;  %v189_v5 = vld [vmem:[#allocation2 + $0x140] sm:$0xff] }
  0x34   :  { %v244_v22 = vsub.f32 %v116_v16, %v180_v17  ;;  %v370_v30 = vmul.f32 %v306_v21, %v306_v21  ;;  %v253_v11 = vsub.f32 %v125_v4, %v189_v5 }
  0x35   :  { %v367_v23 = vmul.f32 %v303_v14, %v303_v14  ;;  %v127_v14 = vld [vmem:[%s3523_s0 + $0x150] sm:$0xff] }
  0x36   :  { %v308_v31 = vadd.f32 1e-06, %v244_v22  ;;  %v130_v22 = vld [vmem:[%s3523_s0 + $0x168] sm:$0xff] }
  0x37   :  { %435 = vadd.xlane.f32.xlu1 %v356_v24  ;;  %433 = vadd.xlane.f32.xlu0 %v355_v27  ;;  %v305_v24 = vadd.f32 1e-06, %v241_v15  ;;  %v182_v27 = vld [vmem:[#allocation2 + $0x108] sm:$0xff]  ;;  %v191_v15 = vld [vmem:[#allocation2 + $0x150] sm:$0xff] }
  0x38   :  { %v246_v32 = vsub.f32 %v118_v26, %v182_v27  ;;  %v372_v40 = vmul.f32 %v308_v31, %v308_v31  ;;  %v255_v21 = vsub.f32 %v127_v14, %v191_v15 }
  0x39   :  { %v369_v33 = vmul.f32 %v305_v24, %v305_v24  ;;  %v129_v24 = vld [vmem:[%s3523_s0 + $0x160] sm:$0xff] }
  0x3a   :  { %v310_v41 = vadd.f32 1e-06, %v246_v32  ;;  %v132_v32 = vld [vmem:[%s3523_s0 + $0x178] sm:$0xff] }
  0x3b   :  { %439 = vadd.xlane.f32.xlu1 %v358_v34  ;;  %437 = vadd.xlane.f32.xlu0 %v357_v37  ;;  %v307_v34 = vadd.f32 1e-06, %v243_v25  ;;  %v184_v37 = vld [vmem:[#allocation2 + $0x118] sm:$0xff]  ;;  %v193_v25 = vld [vmem:[#allocation2 + $0x160] sm:$0xff] }
  0x3c   :  { %v248_v42 = vsub.f32 %v120_v36, %v184_v37  ;;  %v374_v50 = vmul.f32 %v310_v41, %v310_v41  ;;  %v257_v31 = vsub.f32 %v129_v24, %v193_v25 }
  0x3d   :  { %v371_v43 = vmul.f32 %v307_v34, %v307_v34  ;;  %v131_v34 = vld [vmem:[%s3523_s0 + $0x170] sm:$0xff] }
  0x3e   :  { %v312_v51 = vadd.f32 1e-06, %v248_v42  ;;  %v134_v42 = vld [vmem:[%s3523_s0 + $0x188] sm:$0xff] }
  0x3f   :  { %443 = vadd.xlane.f32.xlu1 %v360_v44  ;;  %441 = vadd.xlane.f32.xlu0 %v359_v47  ;;  %v309_v44 = vadd.f32 1e-06, %v245_v35  ;;  %v186_v47 = vld [vmem:[#allocation2 + $0x128] sm:$0xff]  ;;  %v195_v35 = vld [vmem:[#allocation2 + $0x170] sm:$0xff] }
  0x40   :  { %v250_v52 = vsub.f32 %v122_v46, %v186_v47  ;;  %v376_v60 = vmul.f32 %v312_v51, %v312_v51  ;;  %v259_v41 = vsub.f32 %v131_v34, %v195_v35 }
  0x41   :  { %v373_v53 = vmul.f32 %v309_v44, %v309_v44  ;;  %v133_v44 = vld [vmem:[%s3523_s0 + $0x180] sm:$0xff] }
  0x42   :  { %v314_v61 = vadd.f32 1e-06, %v250_v52  ;;  %v136_v52 = vld [vmem:[%s3523_s0 + $0x198] sm:$0xff] }
  0x43   :  { %447 = vadd.xlane.f32.xlu1 %v362_v54  ;;  %445 = vadd.xlane.f32.xlu0 %v361_v57  ;;  %v311_v54 = vadd.f32 1e-06, %v247_v45  ;;  %v188_v57 = vld [vmem:[#allocation2 + $0x138] sm:$0xff]  ;;  %v197_v45 = vld [vmem:[#allocation2 + $0x180] sm:$0xff] }
  0x44   :  { %v252_v62 = vsub.f32 %v124_v56, %v188_v57  ;;  %v378_v6 = vmul.f32 %v314_v61, %v314_v61  ;;  %v261_v51 = vsub.f32 %v133_v44, %v197_v45 }
  0x45   :  { %v375_v63 = vmul.f32 %v311_v54, %v311_v54  ;;  %v135_v54 = vld [vmem:[%s3523_s0 + $0x190] sm:$0xff] }
  0x46   :  { %v316_v7 = vadd.f32 1e-06, %v252_v62  ;;  %v138_v62 = vld [vmem:[%s3523_s0 + $0x1a8] sm:$0xff] }
  0x47   :  { %451 = vadd.xlane.f32.xlu1 %v364_v0  ;;  %449 = vadd.xlane.f32.xlu0 %v363_v3  ;;  %v313_v0 = vadd.f32 1e-06, %v249_v55  ;;  %v190_v3 = vld [vmem:[#allocation2 + $0x148] sm:$0xff]  ;;  %v199_v55 = vld [vmem:[#allocation2 + $0x190] sm:$0xff] }
  0x48   :  { %v254_v8 = vsub.f32 %v126_v2, %v190_v3  ;;  %v380_v16 = vmul.f32 %v316_v7, %v316_v7  ;;  %v263_v61 = vsub.f32 %v135_v54, %v199_v55 }
  0x49   :  { %v377_v9 = vmul.f32 %v313_v0, %v313_v0  ;;  %v137_v0 = vld [vmem:[%s3523_s0 + $0x1a0] sm:$0xff] }
  0x4a   :  { %v318_v17 = vadd.f32 1e-06, %v254_v8  ;;  %v140_v8 = vld [vmem:[%s3523_s0 + $0x1b8] sm:$0xff] }
  0x4b   :  { %455 = vadd.xlane.f32.xlu1 %v366_v10  ;;  %453 = vadd.xlane.f32.xlu0 %v365_v13  ;;  %v315_v10 = vadd.f32 1e-06, %v251_v1  ;;  %v192_v13 = vld [vmem:[#allocation2 + $0x158] sm:$0xff]  ;;  %v201_v1 = vld [vmem:[#allocation2 + $0x1a0] sm:$0xff] }
  0x4c   :  { %v256_v18 = vsub.f32 %v128_v12, %v192_v13  ;;  %v382_v26 = vmul.f32 %v318_v17, %v318_v17  ;;  %v265_v7 = vsub.f32 %v137_v0, %v201_v1  ;;  %v2077_v0 = vld [vmem:[%s3525_s2 + $0x10] sm:$0xff]  ;;  %v2082_v1 = vld [vmem:[%s3525_s2] sm:$0xff] }
  0x4d   :  { %v379_v19 = vmul.f32 %v315_v10, %v315_v10  ;;  %v139_v10 = vld [vmem:[%s3523_s0 + $0x1b0] sm:$0xff] }
  0x4e   :  { %v320_v27 = vadd.f32 1e-06, %v256_v18  ;;  %v142_v18 = vld [vmem:[%s3523_s0 + $0x1c8] sm:$0xff] }
  0x4f   :  { %459 = vadd.xlane.f32.xlu1 %v368_v20  ;;  %457 = vadd.xlane.f32.xlu0 %v367_v23  ;;  %v317_v20 = vadd.f32 1e-06, %v253_v11  ;;  %v194_v23 = vld [vmem:[#allocation2 + $0x168] sm:$0xff]  ;;  %v203_v11 = vld [vmem:[#allocation2 + $0x1b0] sm:$0xff] }
  0x50   :  { %v258_v28 = vsub.f32 %v130_v22, %v194_v23  ;;  %v384_v36 = vmul.f32 %v320_v27, %v320_v27  ;;  %v267_v17 = vsub.f32 %v139_v10, %v203_v11  ;;  %v1175_v10 = vsub.f32 1.0, %v2077_v0  ;;  %v2124_v11 = vld [vmem:[%s3525_s2 + $0x48] sm:$0xff] }
  0x51   :  { %v381_v29 = vmul.f32 %v317_v20, %v317_v20  ;;  %v141_v20 = vld [vmem:[%s3523_s0 + $0x1c0] sm:$0xff] }
  0x52   :  { %v322_v37 = vadd.f32 1e-06, %v258_v28  ;;  %v144_v28 = vld [vmem:[%s3523_s0 + $0x1d8] sm:$0xff] }
  0x53   :  { %463 = vadd.xlane.f32.xlu1 %v370_v30  ;;  %461 = vadd.xlane.f32.xlu0 %v369_v33  ;;  %v319_v30 = vadd.f32 1e-06, %v255_v21  ;;  %v196_v33 = vld [vmem:[#allocation2 + $0x178] sm:$0xff]  ;;  %v205_v21 = vld [vmem:[#allocation2 + $0x1c0] sm:$0xff] }
  0x54   :  { %v260_v38 = vsub.f32 %v132_v32, %v196_v33  ;;  %v386_v46 = vmul.f32 %v322_v37, %v322_v37  ;;  %v269_v27 = vsub.f32 %v141_v20, %v205_v21 }
  0x55   :  { %v383_v39 = vmul.f32 %v319_v30, %v319_v30  ;;  %v143_v30 = vld [vmem:[%s3523_s0 + $0x1d0] sm:$0xff] }
  0x56   :  { %v324_v47 = vadd.f32 1e-06, %v260_v38  ;;  %v146_v38 = vld [vmem:[%s3523_s0 + $0x1e8] sm:$0xff] }
  0x57   :  { %467 = vadd.xlane.f32.xlu1 %v372_v40  ;;  %465 = vadd.xlane.f32.xlu0 %v371_v43  ;;  %v321_v40 = vadd.f32 1e-06, %v257_v31  ;;  %v198_v43 = vld [vmem:[#allocation2 + $0x188] sm:$0xff]  ;;  %v207_v31 = vld [vmem:[#allocation2 + $0x1d0] sm:$0xff] }
  0x58   :  { %v262_v48 = vsub.f32 %v134_v42, %v198_v43  ;;  %v388_v56 = vmul.f32 %v324_v47, %v324_v47  ;;  %v271_v37 = vsub.f32 %v143_v30, %v207_v31  ;;  %v2183_v31 = vld [vmem:[%s3525_s2 + $0x88] sm:$0xff] }
  0x59   :  { %v385_v49 = vmul.f32 %v321_v40, %v321_v40  ;;  %v145_v40 = vld [vmem:[%s3523_s0 + $0x1e0] sm:$0xff] }
  0x5a   :  { %v326_v57 = vadd.f32 1e-06, %v262_v48  ;;  %v148_v48 = vld [vmem:[%s3523_s0 + $0x1f8] sm:$0xff] }
  0x5b   :  { %471 = vadd.xlane.f32.xlu1 %v374_v50  ;;  %469 = vadd.xlane.f32.xlu0 %v373_v53  ;;  %v323_v50 = vadd.f32 1e-06, %v259_v41  ;;  %v200_v53 = vld [vmem:[#allocation2 + $0x198] sm:$0xff]  ;;  %v209_v41 = vld [vmem:[#allocation2 + $0x1e0] sm:$0xff] }
  0x5c   :  { %v264_v58 = vsub.f32 %v136_v52, %v200_v53  ;;  %v390_v2 = vmul.f32 %v326_v57, %v326_v57  ;;  %v273_v47 = vsub.f32 %v145_v40, %v209_v41  ;;  %v1190_v41 = vsub.f32 1.0, %v2183_v31 }
  0x5d   :  { %v387_v59 = vmul.f32 %v323_v50, %v323_v50  ;;  %v147_v50 = vld [vmem:[%s3523_s0 + $0x1f0] sm:$0xff] }
  0x5e   :  { %v328_v3 = vadd.f32 1e-06, %v264_v58 }
  0x5f   :  { %475 = vadd.xlane.f32.xlu1 %v376_v60  ;;  %473 = vadd.xlane.f32.xlu0 %v375_v63  ;;  %v325_v60 = vadd.f32 1e-06, %v261_v51  ;;  %v202_v63 = vld [vmem:[#allocation2 + $0x1a8] sm:$0xff]  ;;  %v211_v51 = vld [vmem:[#allocation2 + $0x1f0] sm:$0xff] }
  0x60   :  { %v266_v4 = vsub.f32 %v138_v62, %v202_v63  ;;  %v392_v12 = vmul.f32 %v328_v3, %v328_v3  ;;  %v275_v57 = vsub.f32 %v147_v50, %v211_v51  ;;  %v2089_v3 = vld [vmem:[%s3525_s2 + $0x18] sm:$0xff] }
  0x61   :  { %v389_v5 = vmul.f32 %v325_v60, %v325_v60 }
  0x62   :  { %v330_v13 = vadd.f32 1e-06, %v266_v4  ;;  %v2094_v4 = vld [vmem:[%s3525_s2 + $0x8] sm:$0xff] }
  0x63   :  { %479 = vadd.xlane.f32.xlu1 %v378_v6  ;;  %477 = vadd.xlane.f32.xlu0 %v377_v9  ;;  %v327_v6 = vadd.f32 1e-06, %v263_v61  ;;  %v204_v9 = vld [vmem:[#allocation2 + $0x1b8] sm:$0xff]  ;;  %v339_v61 = vadd.f32 1e-06, %v275_v57 }
  0x64   :  { %v268_v14 = vsub.f32 %v140_v8, %v204_v9  ;;  %v394_v22 = vmul.f32 %v330_v13, %v330_v13  ;;  %v2112_v8 = vld [vmem:[%s3525_s2 + $0x38] sm:$0xff]  ;;  %v2117_v9 = vld [vmem:[%s3525_s2 + $0x30] sm:$0xff] }
  0x65   :  { %v391_v15 = vmul.f32 %v327_v6, %v327_v6  ;;  %v403_v63 = vmul.f32 %v339_v61, %v339_v61  ;;  %v2134_v13 = vld [vmem:[%s3525_s2 + $0x50] sm:$0xff] }
  0x66   :  { %v332_v23 = vadd.f32 1e-06, %v268_v14  ;;  %v1173_v14 = vsub.f32 1.0, %v2082_v1 }
  0x67   :  { %483 = vadd.xlane.f32.xlu1 %v380_v16  ;;  %481 = vadd.xlane.f32.xlu0 %v379_v19  ;;  %v329_v16 = vadd.f32 1e-06, %v265_v7  ;;  %v206_v19 = vld [vmem:[#allocation2 + $0x1c8] sm:$0xff]  ;;  %v2107_v7 = vld [vmem:[%s3525_s2 + $0x20] sm:$0xff] }
  0x68   :  { %v270_v24 = vsub.f32 %v142_v18, %v206_v19  ;;  %v396_v32 = vmul.f32 %v332_v23, %v332_v23  ;;  %v2147_v18 = vld [vmem:[%s3525_s2 + $0x68] sm:$0xff]  ;;  %v2152_v19 = vld [vmem:[%s3525_s2 + $0x60] sm:$0xff]  ;;  %v1180_v23 = vsub.f32 1.0, %v2112_v8 }
  0x69   :  { %v393_v25 = vmul.f32 %v329_v16, %v329_v16  ;;  %v1174_v16 = vsub.f32 1.0, %v2094_v4 }
  0x6a   :  { %v334_v33 = vadd.f32 1e-06, %v270_v24  ;;  %v2162_v24 = vld [vmem:[%s3525_s2 + $0x78] sm:$0xff] }
  0x6b   :  { %487 = vadd.xlane.f32.xlu1 %v382_v26  ;;  %485 = vadd.xlane.f32.xlu0 %v381_v29  ;;  %v331_v26 = vadd.f32 1e-06, %v267_v17  ;;  %v208_v29 = vld [vmem:[#allocation2 + $0x1d8] sm:$0xff] }
  0x6c   :  { %v272_v34 = vsub.f32 %v144_v28, %v208_v29  ;;  %v398_v42 = vmul.f32 %v334_v33, %v334_v33  ;;  %v2142_v17 = vld [vmem:[%s3525_s2 + $0x58] sm:$0xff]  ;;  %v1179_v28 = vsub.f32 1.0, %v2117_v9  ;;  %v1182_v29 = vsub.f32 1.0, %v2124_v11 }
  0x6d   :  { %v395_v35 = vmul.f32 %v331_v26, %v331_v26  ;;  %v2172_v26 = vld [vmem:[%s3525_s2 + $0x80] sm:$0xff]  ;;  %v1184_v33 = vsub.f32 1.0, %v2142_v17 }
  0x6e   :  { %v336_v43 = vadd.f32 1e-06, %v272_v34  ;;  %v1183_v34 = vsub.f32 1.0, %v2134_v13 }
  0x6f   :  { %491 = vadd.xlane.f32.xlu1 %v384_v36  ;;  %489 = vadd.xlane.f32.xlu0 %v383_v39  ;;  %v333_v36 = vadd.f32 1e-06, %v269_v27  ;;  %v210_v39 = vld [vmem:[#allocation2 + $0x1e8] sm:$0xff] }
  0x70   :  { %v274_v44 = vsub.f32 %v146_v38, %v210_v39  ;;  %v400_v52 = vmul.f32 %v336_v43, %v336_v43  ;;  %v1189_v39 = vsub.f32 1.0, %v2172_v26 }
  0x71   :  { %v397_v45 = vmul.f32 %v333_v36, %v333_v36  ;;  %v1186_v36 = vsub.f32 1.0, %v2147_v18 }
  0x72   :  { %v338_v53 = vadd.f32 1e-06, %v274_v44 }
  0x73   :  { %495 = vadd.xlane.f32.xlu1 %v386_v46  ;;  %493 = vadd.xlane.f32.xlu0 %v385_v49  ;;  %v335_v46 = vadd.f32 1e-06, %v271_v37  ;;  %v212_v49 = vld [vmem:[#allocation2 + $0x1f8] sm:$0xff]  ;;  %v1188_v37 = vsub.f32 1.0, %v2162_v24 }
  0x74   :  { %v276_v54 = vsub.f32 %v148_v48, %v212_v49  ;;  %v402_v58 = vmul.f32 %v338_v53, %v338_v53 }
  0x75   :  { %v399_v55 = vmul.f32 %v335_v46, %v335_v46 }
  0x77   :  { %499 = vadd.xlane.f32.xlu1 %v388_v56  ;;  %497 = vadd.xlane.f32.xlu0 %v387_v59  ;;  %v337_v56 = vadd.f32 1e-06, %v273_v47  ;;  %v340_v59 = vadd.f32 1e-06, %v276_v54 }
  0x79   :  { %v401_v60 = vmul.f32 %v337_v56, %v337_v56  ;;  %v404_v62 = vmul.f32 %v340_v59, %v340_v59 }
  0x7b   :  { %503 = vadd.xlane.f32.xlu1 %v390_v2  ;;  %501 = vadd.xlane.f32.xlu0 %v389_v5  ;;  %v2099_v5 = vld [vmem:[%s3525_s2 + $0x28] sm:$0xff] }
  0x7c   :  { %v1178_v21 = vsub.f32 1.0, %v2099_v5 }
  0x7f   :  { %507 = vadd.xlane.f32.xlu1 %v392_v12  ;;  %505 = vadd.xlane.f32.xlu0 %v391_v15  ;;  %v2129_v12 = vld [vmem:[%s3525_s2 + $0x40] sm:$0xff]  ;;  %v1176_v15 = vsub.f32 1.0, %v2089_v3 }
  0x80   :  { %v1181_v30 = vsub.f32 1.0, %v2129_v12 }
  0x83   :  { %511 = vadd.xlane.f32.xlu1 %v394_v22  ;;  %509 = vadd.xlane.f32.xlu0 %v393_v25  ;;  %v1177_v22 = vsub.f32 1.0, %v2107_v7  ;;  %v2167_v25 = vld [vmem:[%s3525_s2 + $0x70] sm:$0xff] }
  0x84   :  { %v1187_v38 = vsub.f32 1.0, %v2167_v25 }
  0x87   :  { %515 = vadd.xlane.f32.xlu1 %v396_v32  ;;  %513 = vadd.xlane.f32.xlu0 %v395_v35  ;;  %v2188_v32 = vld [vmem:[%s3525_s2 + $0x90] sm:$0xff]  ;;  %v1185_v35 = vsub.f32 1.0, %v2152_v19 }
  0x8b   :  { %519 = vadd.xlane.f32.xlu1 %v398_v42  ;;  %517 = vadd.xlane.f32.xlu0 %v397_v45 }
  0x8f   :  { %523 = vadd.xlane.f32.xlu1 %v400_v52  ;;  %521 = vadd.xlane.f32.xlu0 %v399_v55 }
  0x93   :  { %527 = vadd.xlane.f32.xlu1 %v402_v58  ;;  %525 = vadd.xlane.f32.xlu0 %v401_v60 }
  0x97   :  { %531 = vadd.xlane.f32.xlu1 %v404_v62  ;;  %529 = vadd.xlane.f32.xlu0 %v403_v63 }
  0xa8   :  { %v2084_v2 = vpop.xlane.xlu1 %409  ;;  %v2102_v6 = vpop.xlane.xlu0 %405 }
  0xa9   :  { %1669 = vrsqrt.f32 %v2084_v2  ;;  %vm549_vm0 = vcmp.eq.f32.partialorder %v2084_v2, inf  ;;  %vm551_vm1 = vcmp.eq.f32.partialorder %v2084_v2, 0.0  ;;  %v552_v43 = vand.u32 2147483648, %v2084_v2 }
  0xaa   :  { %1671 = vrsqrt.f32 %v2102_v6  ;;  %v2206_v44 = vmul.f32 %v1175_v10, %v2084_v2  ;;  %vm535_vm2 = vcmp.eq.f32.partialorder %v2102_v6, inf  ;;  %vm537_vm3 = vcmp.eq.f32.partialorder %v2102_v6, 0.0 }
  0xab   :  { %v538_v46 = vand.u32 2147483648, %v2102_v6  ;;  %v2215_v47 = vmul.f32 %v1173_v14, %v2102_v6 }
  0xac   :  { %v2154_v20 = vpop.xlane.xlu1 %411  ;;  %v2175_v27 = vpop.xlane.xlu0 %407 }
  0xad   :  { %1673 = vrsqrt.f32 %v2154_v20  ;;  %vm556_vm4 = vcmp.eq.f32.partialorder %v2154_v20, inf  ;;  %vm558_vm5 = vcmp.eq.f32.partialorder %v2154_v20, 0.0  ;;  %v559_v49 = vand.u32 2147483648, %v2154_v20 }
  0xae   :  { %1675 = vrsqrt.f32 %v2175_v27  ;;  %v2222_v50 = vmul.f32 %v1176_v15, %v2154_v20  ;;  %vm542_vm6 = vcmp.eq.f32.partialorder %v2175_v27, inf  ;;  %vm544_vm7 = vcmp.eq.f32.partialorder %v2175_v27, 0.0 }
  0xaf   :  { %v545_v53 = vand.u32 2147483648, %v2175_v27  ;;  %v2232_v56 = vmul.f32 %v1174_v16, %v2175_v27 }
  0xb0   :  { %v2200_v40 = vpop.xlane.xlu1 %415  ;;  %v2210_v45 = vpop.xlane.xlu0 %413 }
  0xb1   :  { %1677 = vrsqrt.f32 %v2200_v40  ;;  %vm570_vm8 = vcmp.eq.f32.partialorder %v2200_v40, inf  ;;  %vm572_vm9 = vcmp.eq.f32.partialorder %v2200_v40, 0.0  ;;  %v573_v59 = vand.u32 2147483648, %v2200_v40 }
  0xb2   :  { %1679 = vrsqrt.f32 %v2210_v45  ;;  %v2244_v60 = vmul.f32 %v1178_v21, %v2200_v40  ;;  %vm563_vm10 = vcmp.eq.f32.partialorder %v2210_v45, inf  ;;  %vm565_vm11 = vcmp.eq.f32.partialorder %v2210_v45, 0.0 }
  0xb3   :  { %v1670_v48 = vpop.eup %1669  ;;  %v566_v21 = vand.u32 2147483648, %v2210_v45 }
  0xb4   :  { %v1672_v51 = vpop.eup %1671  ;;  %v548_v52 = vmul.f32 %v1670_v48, %v2084_v2  ;;  %v2228_v54 = vpop.xlane.xlu1 %419 }
  0xb5   :  { %v534_v55 = vmul.f32 %v1672_v51, %v2102_v6  ;;  %1681 = vrsqrt.f32 %v2228_v54  ;;  %v2236_v57 = vpop.xlane.xlu0 %417  ;;  %v2264_v51 = vmul.f32 %v1177_v22, %v2210_v45  ;;  %vm584_vm12 = vcmp.eq.f32.partialorder %v2228_v54, inf }
  0xb6   :  { %v550_v58 = vsel %vm549_vm0, %v2084_v2, %v548_v52  ;;  %1683 = vrsqrt.f32 %v2236_v57  ;;  %vm586_vm14 = vcmp.eq.f32.partialorder %v2228_v54, 0.0  ;;  %vm577_vm15 = vcmp.eq.f32.partialorder %v2236_v57, inf }
  0xb7   :  { %v1674_v61 = vpop.eup %1673  ;;  %v553_v62 = vsel %vm551_vm1, %v552_v43, %v550_v58  ;;  %v536_v63 = vsel %vm535_vm2, %v2102_v6, %v534_v55  ;;  %vm579_vm0 = vcmp.eq.f32.partialorder %v2236_v57, 0.0 }
  0xb8   :  { %v1676_v10 = vpop.eup %1675  ;;  %v1047_v14 = vsub.f32 2.0, %v553_v62  ;;  %v539_v15 = vsel %vm537_vm3, %v538_v46, %v536_v63  ;;  %v555_v16 = vmul.f32 %v1674_v61, %v2154_v20  ;;  %v2258_v48 = vpop.xlane.xlu1 %423  ;;  %v587_v46 = vand.u32 2147483648, %v2228_v54 }
  0xb9   :  { %v1045_v2 = vsub.f32 2.0, %v539_v15  ;;  %v541_v43 = vmul.f32 %v1676_v10, %v2175_v27  ;;  %1685 = vrsqrt.f32 %v2258_v48  ;;  %v2279_v62 = vpop.xlane.xlu0 %421  ;;  %vm598_vm1 = vcmp.eq.f32.partialorder %v2258_v48, inf }
  0xba   :  { %v1111_v52 = vmax.f32 %v1047_v14, 0.0  ;;  %v557_v6 = vsel %vm556_vm4, %v2154_v20, %v555_v16  ;;  %1687 = vrsqrt.f32 %v2279_v62  ;;  %vm600_vm2 = vcmp.eq.f32.partialorder %v2258_v48, 0.0 }
  0xbb   :  { %v1678_v55 = vpop.eup %1677  ;;  %v1109_v58 = vmax.f32 %v1045_v2, 0.0  ;;  %v560_v61 = vsel %vm558_vm5, %v559_v49, %v557_v6  ;;  %v543_v22 = vsel %vm542_vm6, %v2175_v27, %v541_v43  ;;  %v580_v43 = vand.u32 2147483648, %v2236_v57 }
  0xbc   :  { %v1680_v63 = vpop.eup %1679  ;;  %v1303_v10 = vmul.f32 %v1111_v52, %v1111_v52  ;;  %v1048_v14 = vsub.f32 2.0, %v560_v61  ;;  %v546_v15 = vsel %vm544_vm7, %v545_v53, %v543_v22  ;;  %v569_v16 = vmul.f32 %v1678_v55, %v2200_v40 }
  0xbd   :  { %v1301_v20 = vmul.f32 %v1109_v58, %v1109_v58  ;;  %v1046_v49 = vsub.f32 2.0, %v546_v15  ;;  %v562_v2 = vmul.f32 %v1680_v63, %v2210_v45  ;;  %v2293_v27 = vmul.f32 %v1179_v28, %v2236_v57 }
  0xbe   :  { %v1112_v6 = vmax.f32 %v1048_v14, 0.0  ;;  %v571_v42 = vsel %vm570_vm8, %v2200_v40, %v569_v16  ;;  %v1367_v63 = vmul.f32 %v1303_v10, %v2077_v0  ;;  %vm591_vm3 = vcmp.eq.f32.partialorder %v2279_v62, inf }
  0xbf   :  { %v1682_v53 = vpop.eup %1681  ;;  %v1365_v52 = vmul.f32 %v1301_v20, %v2082_v1  ;;  %v1110_v55 = vmax.f32 %v1046_v49, 0.0  ;;  %v574_v58 = vsel %vm572_vm9, %v573_v59, %v571_v42  ;;  %v564_v61 = vsel %vm563_vm10, %v2210_v45, %v562_v2  ;;  %v2311_v2 = vpop.xlane.xlu1 %427 }
  0xc0   :  { %v1684_v22 = vpop.eup %1683  ;;  %v1304_v28 = vmul.f32 %v1112_v6, %v1112_v6  ;;  %v1050_v14 = vsub.f32 2.0, %v574_v58  ;;  %v567_v15 = vsel %vm565_vm11, %v566_v21, %v564_v61  ;;  %v583_v20 = vmul.f32 %v1682_v53, %v2228_v54 }
  0xc1   :  { %v1302_v16 = vmul.f32 %v1110_v55, %v1110_v55  ;;  %v1049_v1 = vsub.f32 2.0, %v567_v15  ;;  %v1429_v40 = vadd.f32 %v1365_v52, %v2215_v47  ;;  %v576_v49 = vmul.f32 %v1684_v22, %v2236_v57 }
  0xc2   :  { %v1368_v42 = vmul.f32 %v1304_v28, %v2089_v3  ;;  %v1114_v59 = vmax.f32 %v1050_v14, 0.0  ;;  %v585_v21 = vsel %vm584_vm12, %v2228_v54, %v583_v20  ;;  %v601_v6 = vand.u32 2147483648, %v2258_v48  ;;  %v2330_v14 = vpop.xlane.xlu0 %425 }
  0xc3   :  { %v1686_v0 = vpop.eup %1685  ;;  %v1366_v10 = vmul.f32 %v1302_v16, %v2094_v4  ;;  %v1113_v45 = vmax.f32 %v1049_v1, 0.0  ;;  %v1431_v53 = vadd.f32 %v1367_v63, %v2206_v44  ;;  %v588_v3 = vsel %vm586_vm14, %v587_v46, %v585_v21 }
  0xc4   :  { %v1306_v47 = vmul.f32 %v1114_v59, %v1114_v59  ;;  %v578_v52 = vsel %vm577_vm15, %v2236_v57, %v576_v49  ;;  %v1052_v58 = vsub.f32 2.0, %v588_v3  ;;  %v1495_v22 = vsel %vm1494_vm13, %v1429_v40, 0.0  ;;  %v1688_v1 = vpop.eup %1687  ;;  %v2339_v40 = vpop.xlane.xlu1 %431 }
  0xc5   :  { %v1430_v55 = vadd.f32 %v1366_v10, %v2232_v56  ;;  %v1305_v4 = vmul.f32 %v1113_v45, %v1113_v45  ;;  %v581_v61 = vsel %vm579_vm0, %v580_v43, %v578_v52  ;;  %v1432_v28 = vadd.f32 %v1368_v42, %v2222_v50 }
  0xc6   :  { %v1051_v44 = vsub.f32 2.0, %v581_v61  ;;  %v597_v63 = vmul.f32 %v1686_v0, %v2258_v48  ;;  %v1370_v15 = vmul.f32 %v1306_v47, %v2099_v5  ;;  %v1116_v16 = vmax.f32 %v1052_v58, 0.0  ;;  %v2373_v61 = vld [vmem:[%s3525_s2 + $0xa8] sm:$0xff] }
  0xc7   :  { %v1496_v46 = vsel %vm1494_vm13, %v1430_v55, 0.0  ;;  %v1369_v56 = vmul.f32 %v1305_v4, %v2107_v7  ;;  %v1498_v57 = vsel %vm1494_vm13, %v1431_v53, 0.0  ;;  %v590_v7 = vmul.f32 %v1688_v1, %v2279_v62  ;;  %v2352_v55 = vpop.xlane.xlu0 %429  ;;  %v2357_v4 = vld [vmem:[%s3525_s2 + $0x98] sm:$0xff]  ;;  %v2399_v1 = vld [vmem:[%s3525_s2 + $0xc0] sm:$0xff] }
  0xc8   :  { %v1497_v43 = vadd.f32 %v1496_v46, %v1495_v22  ;;  %v1115_v20 = vmax.f32 %v1051_v44, 0.0  ;;  %v599_v50 = vsel %vm598_vm1, %v2258_v48, %v597_v63  ;;  %v1308_v59 = vmul.f32 %v1116_v16, %v1116_v16  ;;  %v2376_v46 = vpop.xlane.xlu1 %435  ;;  %v2394_v16 = vld [vmem:[%s3525_s2 + $0xc8] sm:$0xff] }
  0xc9   :  { %v1433_v42 = vadd.f32 %v1369_v56, %v2264_v51  ;;  %v602_v5 = vsel %vm600_vm2, %v601_v6, %v599_v50  ;;  %v1500_v45 = vsel %vm1494_vm13, %v1432_v28, 0.0  ;;  %v1434_v21 = vadd.f32 %v1370_v15, %v2244_v60  ;;  %v2362_v60 = vld [vmem:[%s3525_s2 + $0xa0] sm:$0xff] }
  0xca   :  { %v1499_v49 = vadd.f32 %v1498_v57, %v1497_v43  ;;  %v1307_v0 = vmul.f32 %v1115_v20, %v1115_v20  ;;  %v1054_v10 = vsub.f32 2.0, %v602_v5  ;;  %v1372_v53 = vmul.f32 %v1308_v59, %v2112_v8  ;;  %v2381_v8 = vld [vmem:[%s3525_s2 + $0xb8] sm:$0xff] }
  0xcb   :  { %v592_v47 = vsel %vm591_vm3, %v2279_v62, %v590_v7  ;;  %v594_v6 = vand.u32 2147483648, %v2279_v62  ;;  %v1502_v58 = vsel %vm1494_vm13, %v1433_v42, 0.0  ;;  %vm593_vm4 = vcmp.eq.f32.partialorder %v2279_v62, 0.0 }
  0xcc   :  { %v1501_v51 = vadd.f32 %v1500_v45, %v1499_v49  ;;  %v1371_v3 = vmul.f32 %v1307_v0, %v2117_v9  ;;  %v1118_v52 = vmax.f32 %v1054_v10, 0.0  ;;  %v1244_v9 = vmul.f32 %v1180_v23, %v2228_v54  ;;  %v2386_v23 = vld [vmem:[%s3525_s2 + $0xb0] sm:$0xff]  ;;  %v2410_v0 = vpop.xlane.xlu0 %433 }
  0xcd   :  { %1689 = vrsqrt.f32 %v2311_v2  ;;  %v595_v63 = vsel %vm593_vm4, %v594_v6, %v592_v47  ;;  %v1504_v54 = vsel %vm1494_vm13, %v1434_v21, 0.0  ;;  %v1192_v56 = vsub.f32 1.0, %v2357_v4 }
  0xce   :  { %v1503_v22 = vadd.f32 %v1502_v58, %v1501_v51  ;;  %v1435_v28 = vadd.f32 %v1371_v3, %v2293_v27  ;;  %v1310_v44 = vmul.f32 %v1118_v52, %v1118_v52  ;;  %v1053_v15 = vsub.f32 2.0, %v595_v63 }
  0xcf   :  { %v1193_v27 = vsub.f32 1.0, %v2362_v60  ;;  %v1436_v43 = vadd.f32 %v1372_v53, %v1244_v9  ;;  %v1194_v50 = vsub.f32 1.0, %v2373_v61  ;;  %1691 = vrsqrt.f32 %v2330_v14 }
  0xd0   :  { %v1505_v57 = vadd.f32 %v1504_v54, %v1503_v22  ;;  %v1374_v20 = vmul.f32 %v1310_v44, %v2124_v11  ;;  %v1117_v42 = vmax.f32 %v1053_v15, 0.0  ;;  %v1196_v59 = vsub.f32 1.0, %v2381_v8  ;;  %v2421_v11 = vpop.xlane.xlu1 %439  ;;  %v2445_v22 = vpop.xlane.xlu0 %437 }
  0xd1   :  { %v1195_v5 = vsub.f32 1.0, %v2386_v23  ;;  %v1506_v7 = vsel %vm1494_vm13, %v1435_v28, 0.0  ;;  %v1246_v49 = vmul.f32 %v1182_v29, %v2258_v48  ;;  %v1198_v10 = vsub.f32 1.0, %v2394_v16 }
  0xd2   :  { %v1197_v45 = vsub.f32 1.0, %v2399_v1  ;;  %v1507_v21 = vadd.f32 %v1506_v7, %v1505_v57  ;;  %v1245_v53 = vmul.f32 %v1181_v30, %v2279_v62  ;;  %v1309_v47 = vmul.f32 %v1117_v42, %v1117_v42 }
  0xd3   :  { %1693 = vrsqrt.f32 %v2339_v40  ;;  %v1508_v51 = vsel %vm1494_vm13, %v1436_v43, 0.0  ;;  %v1438_v3 = vadd.f32 %v1374_v20, %v1246_v49  ;;  %vm612_vm5 = vcmp.eq.f32.partialorder %v2311_v2, inf }
  0xd4   :  { %vm614_vm6 = vcmp.eq.f32.partialorder %v2311_v2, 0.0  ;;  %v1373_v29 = vmul.f32 %v1309_v47, %v2129_v12  ;;  %v615_v48 = vand.u32 2147483648, %v2311_v2  ;;  %v2428_v30 = vmul.f32 %v1184_v33, %v2311_v2 }
  0xd5   :  { %1695 = vrsqrt.f32 %v2352_v55  ;;  %vm605_vm7 = vcmp.eq.f32.partialorder %v2330_v14, inf  ;;  %vm607_vm8 = vcmp.eq.f32.partialorder %v2330_v14, 0.0  ;;  %v608_v62 = vand.u32 2147483648, %v2330_v14 }
  0xd6   :  { %1697 = vrsqrt.f32 %v2376_v46  ;;  %v1509_v6 = vadd.f32 %v1508_v51, %v1507_v21  ;;  %v1437_v12 = vadd.f32 %v1373_v29, %v1245_v53  ;;  %v2438_v58 = vmul.f32 %v1183_v34, %v2330_v14 }
  0xd7   :  { %v1690_v52 = vpop.eup %1689  ;;  %vm626_vm9 = vcmp.eq.f32.partialorder %v2339_v40, inf  ;;  %v1512_v33 = vsel %vm1494_vm13, %v1438_v3, 0.0  ;;  %vm628_vm10 = vcmp.eq.f32.partialorder %v2339_v40, 0.0  ;;  %1699 = vrsqrt.f32 %v2410_v0 }
  0xd8   :  { %v611_v9 = vmul.f32 %v1690_v52, %v2311_v2  ;;  %v629_v28 = vand.u32 2147483648, %v2339_v40  ;;  %v2451_v44 = vmul.f32 %v1186_v36, %v2339_v40  ;;  %vm619_vm11 = vcmp.eq.f32.partialorder %v2352_v55, inf  ;;  %v2466_v36 = vpop.xlane.xlu1 %443 }
  0xd9   :  { %1701 = vrsqrt.f32 %v2421_v11  ;;  %v1510_v34 = vsel %vm1494_vm13, %v1437_v12, 0.0  ;;  %vm621_vm12 = vcmp.eq.f32.partialorder %v2352_v55, 0.0  ;;  %v622_v54 = vand.u32 2147483648, %v2352_v55  ;;  %v1692_v57 = vpop.eup %1691 }
  0xda   :  { %v613_v63 = vsel %vm612_vm5, %v2311_v2, %v611_v9  ;;  %v2464_v15 = vmul.f32 %v1185_v35, %v2352_v55  ;;  %v1511_v43 = vadd.f32 %v1510_v34, %v1509_v6  ;;  %vm640_vm14 = vcmp.eq.f32.partialorder %v2376_v46, inf }
  0xdb   :  { %v616_v20 = vsel %vm614_vm6, %v615_v48, %v613_v63  ;;  %1703 = vrsqrt.f32 %v2445_v22  ;;  %v604_v7 = vmul.f32 %v1692_v57, %v2330_v14  ;;  %vm642_vm15 = vcmp.eq.f32.partialorder %v2376_v46, 0.0 }
  0xdc   :  { %v1056_v42 = vsub.f32 2.0, %v616_v20  ;;  %v643_v49 = vand.u32 2147483648, %v2376_v46  ;;  %v2478_v21 = vmul.f32 %v1188_v37, %v2376_v46  ;;  %vm633_vm0 = vcmp.eq.f32.partialorder %v2410_v0, inf }
  0xdd   :  { %v1694_v35 = vpop.eup %1693  ;;  %v636_v2 = vand.u32 2147483648, %v2410_v0  ;;  %1705 = vrsqrt.f32 %v2466_v36  ;;  %v606_v47 = vsel %vm605_vm7, %v2330_v14, %v604_v7  ;;  %vm635_vm1 = vcmp.eq.f32.partialorder %v2410_v0, 0.0 }
  0xde   :  { %v1120_v53 = vmax.f32 %v1056_v42, 0.0  ;;  %v625_v51 = vmul.f32 %v1694_v35, %v2339_v40  ;;  %v2491_v37 = vmul.f32 %v1187_v38, %v2410_v0  ;;  %v1513_v29 = vadd.f32 %v1512_v33, %v1511_v43  ;;  %v2503_v38 = vpop.xlane.xlu0 %441 }
  0xdf   :  { %v1696_v3 = vpop.eup %1695  ;;  %v609_v48 = vsel %vm607_vm8, %v608_v62, %v606_v47  ;;  %vm654_vm2 = vcmp.eq.f32.partialorder %v2421_v11, inf  ;;  %v657_v52 = vand.u32 2147483648, %v2421_v11  ;;  %vm656_vm3 = vcmp.eq.f32.partialorder %v2421_v11, 0.0 }
  0xe0   :  { %v1698_v6 = vpop.eup %1697  ;;  %v1312_v12 = vmul.f32 %v1120_v53, %v1120_v53  ;;  %v1055_v9 = vsub.f32 2.0, %v609_v48  ;;  %v627_v34 = vsel %vm626_vm9, %v2339_v40, %v625_v51  ;;  %v618_v63 = vmul.f32 %v1696_v3, %v2352_v55 }
  0xe1   :  { %vm647_vm4 = vcmp.eq.f32.partialorder %v2445_v22, inf  ;;  %v630_v14 = vsel %vm628_vm10, %v629_v28, %v627_v34  ;;  %v639_v62 = vmul.f32 %v1698_v6, %v2376_v46  ;;  %v650_v33 = vand.u32 2147483648, %v2445_v22  ;;  %v1700_v43 = vpop.eup %1699 }
  0xe2   :  { %v2512_v57 = vmul.f32 %v1189_v39, %v2445_v22  ;;  %v1376_v20 = vmul.f32 %v1312_v12, %v2142_v17  ;;  %v1119_v42 = vmax.f32 %v1055_v9, 0.0  ;;  %v1058_v7 = vsub.f32 2.0, %v630_v14 }
  0xe3   :  { %v620_v35 = vsel %vm619_vm11, %v2352_v55, %v618_v63  ;;  %vm649_vm5 = vcmp.eq.f32.partialorder %v2445_v22, 0.0  ;;  %v1702_v40 = vpop.eup %1701  ;;  %v641_v39 = vsel %vm640_vm14, %v2376_v46, %v639_v62  ;;  %v632_v53 = vmul.f32 %v1700_v43, %v2410_v0 }
  0xe4   :  { %v623_v28 = vsel %vm621_vm12, %v622_v54, %v620_v35  ;;  %1707 = vrsqrt.f32 %v2503_v38  ;;  %v1311_v17 = vmul.f32 %v1119_v42, %v1119_v42  ;;  %v1122_v47 = vmax.f32 %v1058_v7, 0.0 }
  0xe5   :  { %v1057_v51 = vsub.f32 2.0, %v623_v28  ;;  %vm668_vm6 = vcmp.eq.f32.partialorder %v2466_v36, inf  ;;  %v1704_v3 = vpop.eup %1703  ;;  %v644_v48 = vsel %vm642_vm15, %v643_v49, %v641_v39  ;;  %v634_v55 = vsel %vm633_vm0, %v2410_v0, %v632_v53 }
  0xe6   :  { %v653_v54 = vmul.f32 %v1702_v40, %v2421_v11  ;;  %vm670_vm7 = vcmp.eq.f32.partialorder %v2466_v36, 0.0  ;;  %v671_v6 = vand.u32 2147483648, %v2466_v36  ;;  %v1440_v12 = vadd.f32 %v1376_v20, %v2428_v30  ;;  %v2552_v40 = vpop.xlane.xlu1 %447 }
  0xe7   :  { %v1375_v9 = vmul.f32 %v1311_v17, %v2134_v13  ;;  %v1314_v34 = vmul.f32 %v1122_v47, %v1122_v47  ;;  %v1121_v63 = vmax.f32 %v1057_v51, 0.0  ;;  %v1706_v14 = vpop.eup %1705  ;;  %v1060_v62 = vsub.f32 2.0, %v644_v48  ;;  %v2559_v51 = vpop.xlane.xlu0 %445 }
  0xe8   :  { %v637_v46 = vsel %vm635_vm1, %v636_v2, %v634_v55  ;;  %v655_v49 = vsel %vm654_vm2, %v2421_v11, %v653_v54  ;;  %v646_v43 = vmul.f32 %v1704_v3, %v2445_v22  ;;  %v667_v2 = vmul.f32 %v1706_v14, %v2466_v36 }
  0xe9   :  { %v1439_v42 = vadd.f32 %v1375_v9, %v2438_v58  ;;  %v1378_v7 = vmul.f32 %v1314_v34, %v2147_v18  ;;  %v1313_v30 = vmul.f32 %v1121_v63, %v1121_v63  ;;  %v1059_v20 = vsub.f32 2.0, %v637_v46 }
  0xea   :  { %v1124_v13 = vmax.f32 %v1060_v62, 0.0  ;;  %v658_v35 = vsel %vm656_vm3, %v657_v52, %v655_v49  ;;  %v648_v0 = vsel %vm647_vm4, %v2445_v22, %v646_v43  ;;  %vm661_vm8 = vcmp.eq.f32.partialorder %v2503_v38, inf  ;;  %v2572_v46 = vpop.xlane.xlu1 %451 }
  0xeb   :  { %v1516_v58 = vsel %vm1494_vm13, %v1440_v12, 0.0  ;;  %v1514_v18 = vsel %vm1494_vm13, %v1439_v42, 0.0  ;;  %v1377_v28 = vmul.f32 %v1313_v30, %v2152_v19  ;;  %v1123_v39 = vmax.f32 %v1059_v20, 0.0  ;;  %v2579_v20 = vpop.xlane.xlu0 %449 }
  0xec   :  { %v1515_v53 = vadd.f32 %v1514_v18, %v1513_v29  ;;  %v1316_v17 = vmul.f32 %v1124_v13, %v1124_v13  ;;  %v1062_v52 = vsub.f32 2.0, %v658_v35  ;;  %v651_v47 = vsel %vm649_vm5, %v650_v33, %v648_v0  ;;  %v2584_v13 = vld [vmem:[%s3525_s2 + $0xd8] sm:$0xff] }
  0xed   :  { %v1442_v3 = vadd.f32 %v1378_v7, %v2451_v44  ;;  %v1441_v48 = vadd.f32 %v1377_v28, %v2464_v15  ;;  %v1315_v55 = vmul.f32 %v1123_v39, %v1123_v39  ;;  %v1061_v54 = vsub.f32 2.0, %v651_v47 }
  0xee   :  { %v1708_v12 = vpop.eup %1707  ;;  %v1517_v9 = vadd.f32 %v1516_v58, %v1515_v53  ;;  %v1380_v34 = vmul.f32 %v1316_v17, %v2162_v24  ;;  %v1126_v19 = vmax.f32 %v1062_v52, 0.0  ;;  %v669_v29 = vsel %vm668_vm6, %v2466_v36, %v667_v2  ;;  %v2608_v53 = vld [vmem:[%s3525_s2 + $0xe0] sm:$0xff] }
  0xef   :  { %v1518_v22 = vsel %vm1494_vm13, %v1441_v48, 0.0  ;;  %v1379_v33 = vmul.f32 %v1315_v55, %v2167_v25  ;;  %v1125_v63 = vmax.f32 %v1061_v54, 0.0  ;;  %v672_v44 = vsel %vm670_vm7, %v671_v6, %v669_v29  ;;  %v2621_v48 = vld [vmem:[%s3525_s2 + $0xf0] sm:$0xff]  ;;  %v2639_v29 = vld [vmem:[%s3525_s2 + $0x100] sm:$0xff] }
  0xf0   :  { %v1519_v15 = vadd.f32 %v1518_v22, %v1517_v9  ;;  %v1318_v14 = vmul.f32 %v1126_v19, %v1126_v19  ;;  %v1064_v62 = vsub.f32 2.0, %v672_v44  ;;  %vm663_vm9 = vcmp.eq.f32.partialorder %v2503_v38, 0.0  ;;  %v2634_v19 = vld [vmem:[%s3525_s2 + $0x108] sm:$0xff] }
  0xf1   :  { %v1520_v24 = vsel %vm1494_vm13, %v1442_v3, 0.0  ;;  %v1443_v49 = vadd.f32 %v1379_v33, %v2491_v37  ;;  %v1317_v43 = vmul.f32 %v1125_v63, %v1125_v63  ;;  %v660_v42 = vmul.f32 %v1708_v12, %v2503_v38  ;;  %v2589_v37 = vld [vmem:[%s3525_s2 + $0xd0] sm:$0xff]  ;;  %v2616_v3 = vld [vmem:[%s3525_s2 + $0xf8] sm:$0xff] }
  0xf2   :  { %v1444_v25 = vadd.f32 %v1380_v34, %v2478_v21  ;;  %v1521_v7 = vadd.f32 %v1520_v24, %v1519_v15  ;;  %v1128_v30 = vmax.f32 %v1064_v62, 0.0  ;;  %v664_v6 = vand.u32 2147483648, %v2503_v38  ;;  %v2594_v21 = vld [vmem:[%s3525_s2 + $0xe8] sm:$0xff]  ;;  %v2629_v34 = vpop.xlane.xlu1 %455 }
  0xf3   :  { %v1522_v35 = vsel %vm1494_vm13, %v1443_v49, 0.0  ;;  %v1381_v0 = vmul.f32 %v1317_v43, %v2172_v26  ;;  %v662_v2 = vsel %vm661_vm8, %v2503_v38, %v660_v42  ;;  %1709 = vrsqrt.f32 %v2552_v40 }
  0xf4   :  { %v1523_v58 = vadd.f32 %v1522_v35, %v1521_v7  ;;  %v1382_v18 = vmul.f32 %v1318_v14, %v2183_v31  ;;  %v1320_v28 = vmul.f32 %v1128_v30, %v1128_v30  ;;  %v665_v39 = vsel %vm663_vm9, %v664_v6, %v662_v2 }
  0xf5   :  { %v1063_v17 = vsub.f32 2.0, %v665_v39  ;;  %v1200_v26 = vsub.f32 1.0, %v2584_v13  ;;  %v1199_v52 = vsub.f32 1.0, %v2589_v37  ;;  %v1202_v47 = vsub.f32 1.0, %v2594_v21 }
  0xf6   :  { %v1524_v55 = vsel %vm1494_vm13, %v1444_v25, 0.0  ;;  %v1254_v54 = vmul.f32 %v1190_v41, %v2421_v11  ;;  %v1445_v12 = vadd.f32 %v1381_v0, %v2512_v57  ;;  %v1384_v9 = vmul.f32 %v1320_v28, %v2357_v4  ;;  %v2646_v57 = vpop.xlane.xlu0 %453 }
  0xf7   :  { %v1525_v22 = vadd.f32 %v1524_v55, %v1523_v58  ;;  %v1127_v33 = vmax.f32 %v1063_v17, 0.0  ;;  %1711 = vrsqrt.f32 %v2559_v51  ;;  %v1201_v31 = vsub.f32 1.0, %v2608_v53 }
  0xf8   :  { %v1446_v41 = vadd.f32 %v1382_v18, %v1254_v54  ;;  %v1256_v11 = vmul.f32 %v1192_v56, %v2466_v36  ;;  %v1204_v63 = vsub.f32 1.0, %v2616_v3  ;;  %v1203_v44 = vsub.f32 1.0, %v2621_v48 }
  0xf9   :  { %v1319_v15 = vmul.f32 %v1127_v33, %v1127_v33  ;;  %1713 = vrsqrt.f32 %v2572_v46  ;;  %v1206_v14 = vsub.f32 1.0, %v2634_v19  ;;  %v1205_v62 = vsub.f32 1.0, %v2639_v29 }
  0xfa   :  { %v1526_v24 = vsel %vm1494_vm13, %v1445_v12, 0.0  ;;  %v1448_v49 = vadd.f32 %v1384_v9, %v1256_v11  ;;  %v3527_v4 = vsub.f32 1.0, %v2188_v32  ;;  %vm682_vm10 = vcmp.eq.f32.partialorder %v2552_v40, inf  ;;  %v2682_v2 = vpop.xlane.xlu0 %457 }
  0xfb   :  { %v1527_v36 = vadd.f32 %v1526_v24, %v1525_v22  ;;  %v1383_v43 = vmul.f32 %v1319_v15, %v2188_v32  ;;  %vm684_vm11 = vcmp.eq.f32.partialorder %v2552_v40, 0.0  ;;  %1715 = vrsqrt.f32 %v2579_v20 }
  0xfc   :  { %v1255_v56 = vmul.f32 %v3527_v4, %v2503_v38  ;;  %v1528_v42 = vsel %vm1494_vm13, %v1446_v41, 0.0  ;;  %v685_v25 = vand.u32 2147483648, %v2552_v40  ;;  %v2666_v7 = vmul.f32 %v1194_v50, %v2552_v40  ;;  %v2669_v38 = vpop.xlane.xlu1 %459 }
  0xfd   :  { %vm675_vm12 = vcmp.eq.f32.partialorder %v2559_v51, inf  ;;  %v1710_v30 = vpop.eup %1709  ;;  %vm677_vm14 = vcmp.eq.f32.partialorder %v2559_v51, 0.0  ;;  %v678_v32 = vand.u32 2147483648, %v2559_v51  ;;  %v2676_v6 = vmul.f32 %v1193_v27, %v2559_v51 }
  0xfe   :  { %1717 = vrsqrt.f32 %v2629_v34  ;;  %v1532_v35 = vsel %vm1494_vm13, %v1448_v49, 0.0  ;;  %v1447_v50 = vadd.f32 %v1383_v43, %v1255_v56  ;;  %v681_v0 = vmul.f32 %v1710_v30, %v2552_v40  ;;  %v2726_v4 = vpop.xlane.xlu0 %461 }
  0xff   :  { %1719 = vrsqrt.f32 %v2646_v57  ;;  %v1529_v58 = vadd.f32 %v1528_v42, %v1527_v36  ;;  %vm696_vm15 = vcmp.eq.f32.partialorder %v2572_v46, inf  ;;  %vm698_vm0 = vcmp.eq.f32.partialorder %v2572_v46, 0.0 }
 0x100   :  { %v699_v18 = vand.u32 2147483648, %v2572_v46  ;;  %v683_v27 = vsel %vm682_vm10, %v2552_v40, %v681_v0  ;;  %v2693_v28 = vmul.f32 %v1196_v59, %v2572_v46  ;;  %vm689_vm1 = vcmp.eq.f32.partialorder %v2579_v20, inf  ;;  %v2710_v40 = vpop.xlane.xlu1 %463 }
 0x101   :  { %1721 = vrsqrt.f32 %v2669_v38  ;;  %v1712_v39 = vpop.eup %1711  ;;  %v686_v17 = vsel %vm684_vm11, %v685_v25, %v683_v27  ;;  %vm691_vm2 = vcmp.eq.f32.partialorder %v2579_v20, 0.0  ;;  %v692_v55 = vand.u32 2147483648, %v2579_v20 }
 0x102   :  { %v2704_v54 = vmul.f32 %v1195_v5, %v2579_v20  ;;  %v1530_v59 = vsel %vm1494_vm13, %v1447_v50, 0.0  ;;  %v1066_v12 = vsub.f32 2.0, %v686_v17  ;;  %v674_v9 = vmul.f32 %v1712_v39, %v2559_v51 }
 0x103   :  { %vm710_vm3 = vcmp.eq.f32.partialorder %v2629_v34, inf  ;;  %v713_v22 = vand.u32 2147483648, %v2629_v34  ;;  %v1714_v33 = vpop.eup %1713  ;;  %v1531_v41 = vadd.f32 %v1530_v59, %v1529_v58  ;;  %v2715_v11 = vmul.f32 %v1198_v10, %v2629_v34 }
 0x104   :  { %vm703_vm4 = vcmp.eq.f32.partialorder %v2646_v57, inf  ;;  %1723 = vrsqrt.f32 %v2682_v2  ;;  %v1130_v5 = vmax.f32 %v1066_v12, 0.0  ;;  %v676_v15 = vsel %vm675_vm12, %v2559_v51, %v674_v9 }
 0x105   :  { %v695_v24 = vmul.f32 %v1714_v33, %v2572_v46  ;;  %vm712_vm5 = vcmp.eq.f32.partialorder %v2629_v34, 0.0  ;;  %vm705_vm6 = vcmp.eq.f32.partialorder %v2646_v57, 0.0  ;;  %v706_v49 = vand.u32 2147483648, %v2646_v57  ;;  %v1716_v10 = vpop.eup %1715 }
 0x106   :  { %v679_v56 = vsel %vm677_vm14, %v678_v32, %v676_v15  ;;  %v2733_v36 = vmul.f32 %v1197_v45, %v2646_v57  ;;  %vm724_vm7 = vcmp.eq.f32.partialorder %v2669_v38, inf  ;;  %1725 = vrsqrt.f32 %v2710_v40 }
 0x107   :  { %v1322_v43 = vmul.f32 %v1130_v5, %v1130_v5  ;;  %v1065_v42 = vsub.f32 2.0, %v679_v56  ;;  %v697_v25 = vsel %vm696_vm15, %v2572_v46, %v695_v24  ;;  %v688_v30 = vmul.f32 %v1716_v10, %v2579_v20 }
 0x108   :  { %vm726_vm8 = vcmp.eq.f32.partialorder %v2669_v38, 0.0  ;;  %v1718_v51 = vpop.eup %1717  ;;  %v1533_v32 = vadd.f32 %v1532_v35, %v1531_v41  ;;  %v700_v45 = vsel %vm698_vm0, %v699_v18, %v697_v25  ;;  %v727_v50 = vand.u32 2147483648, %v2669_v38 }
 0x109   :  { %1727 = vrsqrt.f32 %v2726_v4  ;;  %v1720_v0 = vpop.eup %1719  ;;  %v1386_v58 = vmul.f32 %v1322_v43, %v2373_v61  ;;  %v1129_v27 = vmax.f32 %v1065_v42, 0.0  ;;  %v1068_v39 = vsub.f32 2.0, %v700_v45 }
 0x10a   :  { %v690_v17 = vsel %vm689_vm1, %v2579_v20, %v688_v30  ;;  %vm717_vm9 = vcmp.eq.f32.partialorder %v2682_v2, inf  ;;  %v709_v46 = vmul.f32 %v1718_v51, %v2629_v34  ;;  %v702_v18 = vmul.f32 %v1720_v0, %v2646_v57 }
 0x10b   :  { %v693_v35 = vsel %vm691_vm2, %v692_v55, %v690_v17  ;;  %vm719_vm10 = vcmp.eq.f32.partialorder %v2682_v2, 0.0  ;;  %v1722_v59 = vpop.eup %1721  ;;  %v1321_v12 = vmul.f32 %v1129_v27, %v1129_v27  ;;  %v1132_v61 = vmax.f32 %v1068_v39, 0.0 }
 0x10c   :  { %v1067_v9 = vsub.f32 2.0, %v693_v35  ;;  %v720_v33 = vand.u32 2147483648, %v2682_v2  ;;  %v1450_v41 = vadd.f32 %v1386_v58, %v2666_v7  ;;  %v711_v5 = vsel %vm710_vm3, %v2629_v34, %v709_v46 }
 0x10d   :  { %v704_v20 = vsel %vm703_vm4, %v2646_v57, %v702_v18  ;;  %v723_v55 = vmul.f32 %v1722_v59, %v2669_v38  ;;  %v1385_v15 = vmul.f32 %v1321_v12, %v2362_v60  ;;  %v1324_v24 = vmul.f32 %v1132_v61, %v1132_v61  ;;  %v2790_v18 = vpop.xlane.xlu1 %467 }
 0x10e   :  { %v1131_v10 = vmax.f32 %v1067_v9, 0.0  ;;  %v741_v56 = vand.u32 2147483648, %v2710_v40  ;;  %v1724_v43 = vpop.eup %1723  ;;  %v714_v7 = vsel %vm712_vm5, %v713_v22, %v711_v5  ;;  %v707_v42 = vsel %vm705_vm6, %v706_v49, %v704_v20  ;;  %v2796_v20 = vpop.xlane.xlu0 %465 }
 0x10f   :  { %v725_v25 = vsel %vm724_vm7, %v2669_v38, %v723_v55  ;;  %vm738_vm11 = vcmp.eq.f32.partialorder %v2710_v40, inf  ;;  %vm731_vm12 = vcmp.eq.f32.partialorder %v2726_v4, inf  ;;  %v1449_v60 = vadd.f32 %v1385_v15, %v2676_v6 }
 0x110   :  { %v1388_v30 = vmul.f32 %v1324_v24, %v2381_v8  ;;  %v1323_v51 = vmul.f32 %v1131_v10, %v1131_v10  ;;  %v1070_v45 = vsub.f32 2.0, %v714_v7  ;;  %v1726_v0 = vpop.eup %1725  ;;  %v1536_v34 = vsel %vm1494_vm13, %v1450_v41, 0.0 }
 0x111   :  { %v1069_v22 = vsub.f32 2.0, %v707_v42  ;;  %v728_v57 = vsel %vm726_vm8, %v727_v50, %v725_v25  ;;  %v716_v49 = vmul.f32 %v1724_v43, %v2682_v2  ;;  %vm740_vm14 = vcmp.eq.f32.partialorder %v2710_v40, 0.0 }
 0x112   :  { %vm733_vm15 = vcmp.eq.f32.partialorder %v2726_v4, 0.0  ;;  %v1534_v58 = vsel %vm1494_vm13, %v1449_v60, 0.0  ;;  %v1387_v6 = vmul.f32 %v1323_v51, %v2386_v23  ;;  %v1134_v8 = vmax.f32 %v1070_v45, 0.0  ;;  %v2818_v45 = vpop.xlane.xlu1 %471 }
 0x113   :  { %v734_v27 = vand.u32 2147483648, %v2726_v4  ;;  %v1728_v39 = vpop.eup %1727  ;;  %v1535_v17 = vadd.f32 %v1534_v58, %v1533_v32  ;;  %v1133_v35 = vmax.f32 %v1069_v22, 0.0  ;;  %v1072_v46 = vsub.f32 2.0, %v728_v57 }
 0x114   :  { %v718_v50 = vsel %vm717_vm9, %v2682_v2, %v716_v49  ;;  %v1452_v59 = vadd.f32 %v1388_v30, %v2693_v28  ;;  %v1451_v12 = vadd.f32 %v1387_v6, %v2704_v54  ;;  %v1326_v61 = vmul.f32 %v1134_v8, %v1134_v8 }
 0x115   :  { %v721_v23 = vsel %vm719_vm10, %v720_v33, %v718_v50  ;;  %v1537_v9 = vadd.f32 %v1536_v34, %v1535_v17  ;;  %v1325_v41 = vmul.f32 %v1133_v35, %v1133_v35  ;;  %v1136_v5 = vmax.f32 %v1072_v46, 0.0  ;;  %v2806_v33 = vld [vmem:[%s3525_s2 + $0x110] sm:$0xff]  ;;  %v2850_v46 = vld [vmem:[%s3525_s2 + $0x128] sm:$0xff] }
 0x116   :  { %v1071_v32 = vsub.f32 2.0, %v721_v23  ;;  %v1538_v55 = vsel %vm1494_vm13, %v1451_v12, 0.0  ;;  %v1390_v15 = vmul.f32 %v1326_v61, %v2394_v16  ;;  %v737_v24 = vmul.f32 %v1726_v0, %v2710_v40  ;;  %v2823_v0 = vld [vmem:[%s3525_s2 + $0x118] sm:$0xff]  ;;  %v2861_v23 = vpop.xlane.xlu1 %475 }
 0x117   :  { %v730_v28 = vmul.f32 %v1728_v39, %v2726_v4  ;;  %v1539_v10 = vadd.f32 %v1538_v55, %v1537_v9  ;;  %v1389_v54 = vmul.f32 %v1325_v41, %v2399_v1  ;;  %v1328_v43 = vmul.f32 %v1136_v5, %v1136_v5 }
 0x118   :  { %v1135_v7 = vmax.f32 %v1071_v32, 0.0  ;;  %v1540_v42 = vsel %vm1494_vm13, %v1452_v59, 0.0  ;;  %v739_v16 = vsel %vm738_vm11, %v2710_v40, %v737_v24  ;;  %1729 = vrsqrt.f32 %v2790_v18 }
 0x119   :  { %v732_v25 = vsel %vm731_vm12, %v2726_v4, %v730_v28  ;;  %v1454_v1 = vadd.f32 %v1390_v15, %v2715_v11  ;;  %v1541_v60 = vadd.f32 %v1540_v42, %v1539_v10  ;;  %v1453_v30 = vadd.f32 %v1389_v54, %v2733_v36  ;;  %v2834_v36 = vld [vmem:[%s3525_s2 + $0x120] sm:$0xff] }
 0x11a   :  { %v1327_v51 = vmul.f32 %v1135_v7, %v1135_v7  ;;  %v1392_v34 = vmul.f32 %v1328_v43, %v2584_v13  ;;  %v742_v22 = vsel %vm740_vm14, %v741_v56, %v739_v16  ;;  %v735_v57 = vsel %vm733_vm15, %v734_v27, %v732_v25  ;;  %v2841_v56 = vpop.xlane.xlu0 %469  ;;  %v2895_v7 = vpop.xlane.xlu1 %479 }
 0x11b   :  { %v1207_v11 = vsub.f32 1.0, %v2806_v33  ;;  %v1542_v49 = vsel %vm1494_vm13, %v1453_v30, 0.0  ;;  %v1263_v58 = vmul.f32 %v1199_v52, %v2682_v2  ;;  %v1074_v8 = vsub.f32 2.0, %v742_v22 }
 0x11c   :  { %v1391_v6 = vmul.f32 %v1327_v51, %v2589_v37  ;;  %v1543_v39 = vadd.f32 %v1542_v49, %v1541_v60  ;;  %v1264_v27 = vmul.f32 %v1200_v26, %v2669_v38  ;;  %v1073_v17 = vsub.f32 2.0, %v735_v57 }
 0x11d   :  { %v1208_v35 = vsub.f32 1.0, %v2823_v0  ;;  %v1544_v52 = vsel %vm1494_vm13, %v1454_v1, 0.0  ;;  %v1138_v37 = vmax.f32 %v1074_v8, 0.0  ;;  %v1209_v50 = vsub.f32 1.0, %v2834_v36 }
 0x11e   :  { %v1455_v2 = vadd.f32 %v1391_v6, %v1263_v58  ;;  %v1456_v59 = vadd.f32 %v1392_v34, %v1264_v27  ;;  %v1545_v12 = vadd.f32 %v1544_v52, %v1543_v39  ;;  %v1137_v61 = vmax.f32 %v1073_v17, 0.0  ;;  %v2934_v27 = vpop.xlane.xlu1 %483 }
 0x11f   :  { %1731 = vrsqrt.f32 %v2796_v20  ;;  %v1266_v13 = vmul.f32 %v1202_v47, %v2710_v40  ;;  %v1330_v26 = vmul.f32 %v1138_v37, %v1138_v37  ;;  %v1265_v38 = vmul.f32 %v1201_v31, %v2726_v4  ;;  %v2870_v40 = vpop.xlane.xlu0 %473 }
 0x120   :  { %v1210_v9 = vsub.f32 1.0, %v2850_v46  ;;  %v1546_v41 = vsel %vm1494_vm13, %v1455_v2, 0.0  ;;  %v1329_v5 = vmul.f32 %v1137_v61, %v1137_v61  ;;  %vm752_vm0 = vcmp.eq.f32.partialorder %v2790_v18, inf }
 0x121   :  { %1733 = vrsqrt.f32 %v2818_v45  ;;  %v1547_v32 = vadd.f32 %v1546_v41, %v1545_v12  ;;  %v1394_v55 = vmul.f32 %v1330_v26, %v2594_v21  ;;  %vm754_vm1 = vcmp.eq.f32.partialorder %v2790_v18, 0.0 }
 0x122   :  { %v755_v47 = vand.u32 2147483648, %v2790_v18  ;;  %v1730_v31 = vpop.eup %1729  ;;  %v1548_v4 = vsel %vm1494_vm13, %v1456_v59, 0.0  ;;  %v1393_v15 = vmul.f32 %v1329_v5, %v2608_v53  ;;  %v2877_v24 = vmul.f32 %v1204_v63, %v2790_v18 }
 0x123   :  { %1735 = vrsqrt.f32 %v2841_v56  ;;  %v751_v21 = vmul.f32 %v1730_v31, %v2790_v18  ;;  %vm745_vm2 = vcmp.eq.f32.partialorder %v2796_v20, inf  ;;  %vm747_vm3 = vcmp.eq.f32.partialorder %v2796_v20, 0.0  ;;  %v2909_v60 = vpop.xlane.xlu0 %477 }
 0x124   :  { %v748_v28 = vand.u32 2147483648, %v2796_v20  ;;  %v1458_v10 = vadd.f32 %v1394_v55, %v1266_v13  ;;  %v1457_v54 = vadd.f32 %v1393_v15, %v1265_v38  ;;  %v2887_v53 = vmul.f32 %v1203_v44, %v2796_v20 }
 0x125   :  { %1737 = vrsqrt.f32 %v2861_v23  ;;  %v1549_v63 = vadd.f32 %v1548_v4, %v1547_v32  ;;  %v753_v43 = vsel %vm752_vm0, %v2790_v18, %v751_v21  ;;  %vm766_vm4 = vcmp.eq.f32.partialorder %v2818_v45, inf }
 0x126   :  { %vm768_vm5 = vcmp.eq.f32.partialorder %v2818_v45, 0.0  ;;  %v756_v42 = vsel %vm754_vm1, %v755_v47, %v753_v43  ;;  %v769_v16 = vand.u32 2147483648, %v2818_v45  ;;  %v2903_v44 = vmul.f32 %v1206_v14, %v2818_v45 }
 0x127   :  { %vm759_vm6 = vcmp.eq.f32.partialorder %v2841_v56, inf  ;;  %v1076_v25 = vsub.f32 2.0, %v756_v42  ;;  %vm761_vm7 = vcmp.eq.f32.partialorder %v2841_v56, 0.0  ;;  %v762_v1 = vand.u32 2147483648, %v2841_v56  ;;  %v2958_v5 = vpop.xlane.xlu0 %481 }
 0x128   :  { %1739 = vrsqrt.f32 %v2870_v40  ;;  %v1552_v30 = vsel %vm1494_vm13, %v1458_v10, 0.0  ;;  %v1550_v51 = vsel %vm1494_vm13, %v1457_v54, 0.0  ;;  %v2916_v14 = vmul.f32 %v1205_v62, %v2841_v56 }
 0x129   :  { %v1732_v18 = vpop.eup %1731  ;;  %1741 = vrsqrt.f32 %v2895_v7  ;;  %v1551_v34 = vadd.f32 %v1550_v51, %v1549_v63  ;;  %v1140_v22 = vmax.f32 %v1076_v25, 0.0  ;;  %vm780_vm8 = vcmp.eq.f32.partialorder %v2861_v23, inf }
 0x12a   :  { %v744_v57 = vmul.f32 %v1732_v18, %v2796_v20  ;;  %vm782_vm9 = vcmp.eq.f32.partialorder %v2861_v23, 0.0  ;;  %v783_v58 = vand.u32 2147483648, %v2861_v23  ;;  %v2926_v6 = vmul.f32 %v1208_v35, %v2861_v23 }
 0x12b   :  { %v1734_v49 = vpop.eup %1733  ;;  %1743 = vrsqrt.f32 %v2909_v60  ;;  %v1332_v62 = vmul.f32 %v1140_v22, %v1140_v22  ;;  %vm773_vm10 = vcmp.eq.f32.partialorder %v2870_v40, inf  ;;  %vm775_vm11 = vcmp.eq.f32.partialorder %v2870_v40, 0.0 }
 0x12c   :  { %v746_v8 = vsel %vm745_vm2, %v2796_v20, %v744_v57  ;;  %v765_v39 = vmul.f32 %v1734_v49, %v2818_v45  ;;  %v776_v35 = vand.u32 2147483648, %v2870_v40  ;;  %v2943_v2 = vmul.f32 %v1207_v11, %v2870_v40 }
 0x12d   :  { %v1736_v17 = vpop.eup %1735  ;;  %v749_v52 = vsel %vm747_vm3, %v748_v28, %v746_v8  ;;  %v1553_v37 = vadd.f32 %v1552_v30, %v1551_v34  ;;  %v1396_v20 = vmul.f32 %v1332_v62, %v2616_v3  ;;  %vm794_vm12 = vcmp.eq.f32.partialorder %v2895_v7, inf }
 0x12e   :  { %v1075_v59 = vsub.f32 2.0, %v749_v52  ;;  %v767_v12 = vsel %vm766_vm4, %v2818_v45, %v765_v39  ;;  %v758_v61 = vmul.f32 %v1736_v17, %v2841_v56  ;;  %1745 = vrsqrt.f32 %v2934_v27 }
 0x12f   :  { %v1738_v13 = vpop.eup %1737  ;;  %v770_v26 = vsel %vm768_vm5, %v769_v16, %v767_v12  ;;  %vm796_vm14 = vcmp.eq.f32.partialorder %v2895_v7, 0.0  ;;  %v797_v32 = vand.u32 2147483648, %v2895_v7  ;;  %vm787_vm15 = vcmp.eq.f32.partialorder %v2909_v60, inf }
 0x130   :  { %v1139_v11 = vmax.f32 %v1075_v59, 0.0  ;;  %v1078_v38 = vsub.f32 2.0, %v770_v26  ;;  %v760_v41 = vsel %vm759_vm6, %v2841_v56, %v758_v61  ;;  %v779_v45 = vmul.f32 %v1738_v13, %v2861_v23 }
 0x131   :  { %v763_v3 = vsel %vm761_vm7, %v762_v1, %v760_v41  ;;  %v790_v15 = vand.u32 2147483648, %v2909_v60  ;;  %v1460_v28 = vadd.f32 %v1396_v20, %v2877_v24  ;;  %vm789_vm0 = vcmp.eq.f32.partialorder %v2909_v60, 0.0 }
 0x132   :  { %v1740_v55 = vpop.eup %1739  ;;  %v1331_v47 = vmul.f32 %v1139_v11, %v1139_v11  ;;  %v1142_v31 = vmax.f32 %v1078_v38, 0.0  ;;  %v1077_v4 = vsub.f32 2.0, %v763_v3  ;;  %v781_v56 = vsel %vm780_vm8, %v2861_v23, %v779_v45  ;;  %v3009_v11 = vpop.xlane.xlu1 %487 }
 0x133   :  { %v1742_v21 = vpop.eup %1741  ;;  %v772_v10 = vmul.f32 %v1740_v55, %v2870_v40  ;;  %vm808_vm1 = vcmp.eq.f32.partialorder %v2934_v27, inf  ;;  %1747 = vrsqrt.f32 %v2958_v5  ;;  %v784_v42 = vsel %vm782_vm9, %v783_v58, %v781_v56  ;;  %v1020_v56 = vld [vmem:[%s3525_s2 + $0x138] sm:$0xff] }
 0x134   :  { %v1395_v54 = vmul.f32 %v1331_v47, %v2621_v48  ;;  %v1334_v63 = vmul.f32 %v1142_v31, %v1142_v31  ;;  %v1141_v43 = vmax.f32 %v1077_v4, 0.0  ;;  %v1080_v16 = vsub.f32 2.0, %v784_v42 }
 0x135   :  { %v1744_v24 = vpop.eup %1743  ;;  %v774_v25 = vsel %vm773_vm10, %v2870_v40, %v772_v10  ;;  %v793_v1 = vmul.f32 %v1742_v21, %v2895_v7  ;;  %vm810_vm2 = vcmp.eq.f32.partialorder %v2934_v27, 0.0  ;;  %v1556_v49 = vsel %vm1494_vm13, %v1460_v28, 0.0  ;;  %v3020_v21 = vpop.xlane.xlu0 %485 }
 0x136   :  { %v1459_v18 = vadd.f32 %v1395_v54, %v2887_v53  ;;  %v1398_v30 = vmul.f32 %v1334_v63, %v2634_v19  ;;  %v1333_v48 = vmul.f32 %v1141_v43, %v1141_v43  ;;  %v777_v51 = vsel %vm775_vm11, %v776_v35, %v774_v25  ;;  %v1019_v54 = vld [vmem:[%s3525_s2 + $0x130] sm:$0xff] }
 0x137   :  { %v1144_v23 = vmax.f32 %v1080_v16, 0.0  ;;  %v1079_v34 = vsub.f32 2.0, %v777_v51  ;;  %v795_v22 = vsel %vm794_vm12, %v2895_v7, %v793_v1  ;;  %v786_v57 = vmul.f32 %v1744_v24, %v2909_v60  ;;  %v3033_v1 = vpop.xlane.xlu1 %491 }
 0x138   :  { %v1554_v58 = vsel %vm1494_vm13, %v1459_v18, 0.0  ;;  %v1397_v53 = vmul.f32 %v1333_v48, %v2639_v29  ;;  %v798_v19 = vsel %vm796_vm14, %v797_v32, %v795_v22  ;;  %v1746_v62 = vpop.eup %1745  ;;  %v1462_v52 = vadd.f32 %v1398_v30, %v2903_v44 }
 0x139   :  { %v1555_v40 = vadd.f32 %v1554_v58, %v1553_v37  ;;  %v1336_v8 = vmul.f32 %v1144_v23, %v1144_v23  ;;  %v1143_v39 = vmax.f32 %v1079_v34, 0.0  ;;  %v1082_v17 = vsub.f32 2.0, %v798_v19 }
 0x13a   :  { %v1461_v35 = vadd.f32 %v1397_v53, %v2916_v14  ;;  %v788_v59 = vsel %vm787_vm15, %v2909_v60, %v786_v57  ;;  %v807_v12 = vmul.f32 %v1746_v62, %v2934_v27  ;;  %v811_v20 = vand.u32 2147483648, %v2934_v27  ;;  %v3061_v62 = vld [vmem:[%s3525_s2 + $0x158] sm:$0xff] }
 0x13b   :  { %v1557_v61 = vadd.f32 %v1556_v49, %v1555_v40  ;;  %v1335_v29 = vmul.f32 %v1143_v39, %v1143_v39  ;;  %v1146_v13 = vmax.f32 %v1082_v17, 0.0  ;;  %v1400_v26 = vmul.f32 %v1336_v8, %v2823_v0  ;;  %v3046_v49 = vld [vmem:[%s3525_s2 + $0x148] sm:$0xff] }
 0x13c   :  { %v1558_v37 = vsel %vm1494_vm13, %v1461_v35, 0.0  ;;  %v791_v44 = vsel %vm789_vm0, %v790_v15, %v788_v59  ;;  %v809_v14 = vsel %vm808_vm1, %v2934_v27, %v807_v12  ;;  %vm801_vm3 = vcmp.eq.f32.partialorder %v2958_v5, inf }
 0x13d   :  { %v1748_v38 = vpop.eup %1747  ;;  %v1559_v41 = vadd.f32 %v1558_v37, %v1557_v61  ;;  %v1399_v3 = vmul.f32 %v1335_v29, %v2806_v33  ;;  %v1338_v45 = vmul.f32 %v1146_v13, %v1146_v13  ;;  %v1560_v32 = vsel %vm1494_vm13, %v1462_v52, 0.0  ;;  %v3067_v52 = vpop.xlane.xlu1 %495 }
 0x13e   :  { %v1081_v55 = vsub.f32 2.0, %v791_v44  ;;  %v812_v0 = vsel %vm810_vm2, %v811_v20, %v809_v14  ;;  %v800_v47 = vmul.f32 %v1748_v38, %v2958_v5  ;;  %vm803_vm4 = vcmp.eq.f32.partialorder %v2958_v5, 0.0 }
 0x13f   :  { %v1561_v31 = vadd.f32 %v1560_v32, %v1559_v41  ;;  %v1463_v4 = vadd.f32 %v1399_v3, %v2943_v2  ;;  %v804_v15 = vand.u32 2147483648, %v2958_v5  ;;  %v1464_v33 = vadd.f32 %v1400_v26, %v2926_v6 }
 0x140   :  { %v1145_v28 = vmax.f32 %v1081_v55, 0.0  ;;  %v1084_v10 = vsub.f32 2.0, %v812_v0  ;;  %v802_v2 = vsel %vm801_vm3, %v2958_v5, %v800_v47  ;;  %v1402_v43 = vmul.f32 %v1338_v45, %v2850_v46  ;;  %v3107_v0 = vld [vmem:[%s3525_s2 + $0x168] sm:$0xff] }
 0x141   :  { %v1562_v63 = vsel %vm1494_vm13, %v1463_v4, 0.0  ;;  %v805_v42 = vsel %vm803_vm4, %v804_v15, %v802_v2  ;;  %1749 = vrsqrt.f32 %v3009_v11  ;;  %v1274_v18 = vmul.f32 %v1210_v9, %v2895_v7  ;;  %v3051_v9 = vld [vmem:[%s3525_s2 + $0x140] sm:$0xff]  ;;  %v3109_v47 = vpop.xlane.xlu1 %499 }
 0x142   :  { %v1563_v6 = vadd.f32 %v1562_v63, %v1561_v31  ;;  %v1337_v24 = vmul.f32 %v1145_v28, %v1145_v28  ;;  %v1148_v16 = vmax.f32 %v1084_v10, 0.0  ;;  %v1083_v25 = vsub.f32 2.0, %v805_v42  ;;  %v3121_v10 = vld [vmem:[%s3525_s2 + $0x160] sm:$0xff] }
 0x143   :  { %v1273_v30 = vmul.f32 %v1209_v50, %v2909_v60  ;;  %v1212_v48 = vsub.f32 1.0, %v1020_v56  ;;  %v1211_v51 = vsub.f32 1.0, %v1019_v54  ;;  %v1564_v23 = vsel %vm1494_vm13, %v1464_v33, 0.0  ;;  %v3054_v50 = vpop.xlane.xlu0 %489 }
 0x144   :  { %v1401_v34 = vmul.f32 %v1337_v24, %v2834_v36  ;;  %v1340_v22 = vmul.f32 %v1148_v16, %v1148_v16  ;;  %v1147_v57 = vmax.f32 %v1083_v25, 0.0  ;;  %v1466_v58 = vadd.f32 %v1402_v43, %v1274_v18 }
 0x145   :  { %v1565_v46 = vadd.f32 %v1564_v23, %v1563_v6  ;;  %1751 = vrsqrt.f32 %v3020_v21  ;;  %v1276_v60 = vmul.f32 %v1212_v48, %v2934_v27  ;;  %v1214_v19 = vsub.f32 1.0, %v3046_v49 }
 0x146   :  { %v1465_v7 = vadd.f32 %v1401_v34, %v1273_v30  ;;  %v1339_v36 = vmul.f32 %v1147_v57, %v1147_v57  ;;  %v1404_v53 = vmul.f32 %v1340_v22, %v1020_v56  ;;  %1753 = vrsqrt.f32 %v3033_v1  ;;  %v3145_v22 = vpop.xlane.xlu1 %503 }
 0x147   :  { %v1275_v8 = vmul.f32 %v1211_v51, %v2958_v5  ;;  %v1213_v17 = vsub.f32 1.0, %v3051_v9  ;;  %v1568_v27 = vsel %vm1494_vm13, %v1466_v58, 0.0  ;;  %vm822_vm5 = vcmp.eq.f32.partialorder %v3009_v11, inf  ;;  %v3077_v5 = vld [vmem:[%s3525_s2 + $0x150] sm:$0xff]  ;;  %v3084_v26 = vpop.xlane.xlu0 %493 }
 0x148   :  { %v1566_v40 = vsel %vm1494_vm13, %v1465_v7, 0.0  ;;  %v1403_v39 = vmul.f32 %v1339_v36, %v1019_v54  ;;  %vm824_vm6 = vcmp.eq.f32.partialorder %v3009_v11, 0.0  ;;  %v825_v12 = vand.u32 2147483648, %v3009_v11 }
 0x149   :  { %v1567_v35 = vadd.f32 %v1566_v40, %v1565_v46  ;;  %v1216_v61 = vsub.f32 1.0, %v3061_v62  ;;  %1755 = vrsqrt.f32 %v3054_v50  ;;  %v1468_v13 = vadd.f32 %v1404_v53, %v1276_v60 }
 0x14a   :  { %v1467_v59 = vadd.f32 %v1403_v39, %v1275_v8  ;;  %v3081_v37 = vmul.f32 %v1214_v19, %v3009_v11  ;;  %vm815_vm7 = vcmp.eq.f32.partialorder %v3020_v21, inf  ;;  %vm817_vm8 = vcmp.eq.f32.partialorder %v3020_v21, 0.0 }
 0x14b   :  { %v1750_v29 = vpop.eup %1749  ;;  %v1569_v20 = vadd.f32 %v1568_v27, %v1567_v35  ;;  %v818_v14 = vand.u32 2147483648, %v3020_v21  ;;  %v3090_v38 = vmul.f32 %v1213_v17, %v3020_v21  ;;  %vm836_vm9 = vcmp.eq.f32.partialorder %v3033_v1, inf  ;;  %v3129_v43 = vpop.xlane.xlu0 %497 }
 0x14c   :  { %v821_v44 = vmul.f32 %v1750_v29, %v3009_v11  ;;  %vm838_vm10 = vcmp.eq.f32.partialorder %v3033_v1, 0.0  ;;  %v1215_v41 = vsub.f32 1.0, %v3077_v5  ;;  %1757 = vrsqrt.f32 %v3067_v52 }
 0x14d   :  { %v1570_v3 = vsel %vm1494_vm13, %v1467_v59, 0.0  ;;  %v839_v32 = vand.u32 2147483648, %v3033_v1  ;;  %v3102_v55 = vmul.f32 %v1216_v61, %v3033_v1  ;;  %v1572_v4 = vsel %vm1494_vm13, %v1468_v13, 0.0 }
 0x14e   :  { %v823_v45 = vsel %vm822_vm5, %v3009_v11, %v821_v44  ;;  %v1571_v15 = vadd.f32 %v1570_v3, %v1569_v20  ;;  %1759 = vrsqrt.f32 %v3084_v26  ;;  %vm829_vm11 = vcmp.eq.f32.partialorder %v3054_v50, inf }
 0x14f   :  { %v1752_v31 = vpop.eup %1751  ;;  %v826_v33 = vsel %vm824_vm6, %v825_v12, %v823_v45  ;;  %vm831_vm12 = vcmp.eq.f32.partialorder %v3054_v50, 0.0  ;;  %v832_v2 = vand.u32 2147483648, %v3054_v50  ;;  %v3125_v11 = vmul.f32 %v1215_v41, %v3054_v50 }
 0x150   :  { %v1086_v28 = vsub.f32 2.0, %v826_v33  ;;  %v814_v56 = vmul.f32 %v1752_v31, %v3020_v21  ;;  %v1754_v54 = vpop.eup %1753  ;;  %v1218_v63 = vsub.f32 1.0, %v3107_v0  ;;  %1761 = vrsqrt.f32 %v3109_v47 }
 0x151   :  { %v835_v24 = vmul.f32 %v1754_v54, %v3033_v1  ;;  %vm850_vm14 = vcmp.eq.f32.partialorder %v3067_v52, inf  ;;  %v1573_v16 = vadd.f32 %v1572_v4, %v1571_v15  ;;  %vm852_vm15 = vcmp.eq.f32.partialorder %v3067_v52, 0.0 }
 0x152   :  { %v1150_v42 = vmax.f32 %v1086_v28, 0.0  ;;  %v816_v6 = vsel %vm815_vm7, %v3020_v21, %v814_v56  ;;  %v853_v18 = vand.u32 2147483648, %v3067_v52  ;;  %v1217_v30 = vsub.f32 1.0, %v3121_v10 }
 0x153   :  { %v819_v25 = vsel %vm817_vm8, %v818_v14, %v816_v6  ;;  %v1756_v48 = vpop.eup %1755  ;;  %v837_v34 = vsel %vm836_vm9, %v3033_v1, %v835_v24  ;;  %1763 = vrsqrt.f32 %v3129_v43  ;;  %vm843_vm0 = vcmp.eq.f32.partialorder %v3084_v26, inf }
 0x154   :  { %v1342_v51 = vmul.f32 %v1150_v42, %v1150_v42  ;;  %v1085_v23 = vsub.f32 2.0, %v819_v25  ;;  %v840_v21 = vsel %vm838_vm10, %v839_v32, %v837_v34  ;;  %v828_v57 = vmul.f32 %v1756_v48, %v3054_v50 }
 0x155   :  { %vm845_vm1 = vcmp.eq.f32.partialorder %v3084_v26, 0.0  ;;  %v1088_v7 = vsub.f32 2.0, %v840_v21  ;;  %v846_v36 = vand.u32 2147483648, %v3084_v26  ;;  %v3158_v1 = vmul.f32 %v1217_v30, %v3084_v26 }
 0x156   :  { %v1406_v58 = vmul.f32 %v1342_v51, %v3046_v49  ;;  %v1149_v46 = vmax.f32 %v1085_v23, 0.0  ;;  %v1758_v60 = vpop.eup %1757  ;;  %v830_v53 = vsel %vm829_vm11, %v3054_v50, %v828_v57  ;;  %vm864_vm2 = vcmp.eq.f32.partialorder %v3109_v47, inf }
 0x157   :  { %1765 = vrsqrt.f32 %v3145_v22  ;;  %v1152_v40 = vmax.f32 %v1088_v7, 0.0  ;;  %v833_v49 = vsel %vm831_vm12, %v832_v2, %v830_v53  ;;  %vm866_vm3 = vcmp.eq.f32.partialorder %v3109_v47, 0.0 }
 0x158   :  { %v1341_v19 = vmul.f32 %v1149_v46, %v1149_v46  ;;  %v1760_v8 = vpop.eup %1759  ;;  %v1087_v39 = vsub.f32 2.0, %v833_v49  ;;  %v849_v17 = vmul.f32 %v1758_v60, %v3067_v52  ;;  %v867_v27 = vand.u32 2147483648, %v3109_v47  ;;  %v1028_v46 = vld [vmem:[%s3525_s2 + $0x178] sm:$0xff] }
 0x159   :  { %vm857_vm4 = vcmp.eq.f32.partialorder %v3129_v43, inf  ;;  %v1470_v35 = vadd.f32 %v1406_v58, %v3081_v37  ;;  %v1344_v12 = vmul.f32 %v1152_v40, %v1152_v40  ;;  %v842_v61 = vmul.f32 %v1760_v8, %v3084_v26 }
 0x15a   :  { %v1405_v59 = vmul.f32 %v1341_v19, %v3051_v9  ;;  %vm859_vm5 = vcmp.eq.f32.partialorder %v3129_v43, 0.0  ;;  %v1762_v50 = vpop.eup %1761  ;;  %v1151_v29 = vmax.f32 %v1087_v39, 0.0  ;;  %v851_v13 = vsel %vm850_vm14, %v3067_v52, %v849_v17  ;;  %v1027_v19 = vld [vmem:[%s3525_s2 + $0x170] sm:$0xff] }
 0x15b   :  { %v860_v20 = vand.u32 2147483648, %v3129_v43  ;;  %vm878_vm6 = vcmp.eq.f32.partialorder %v3145_v22, inf  ;;  %v1408_v37 = vmul.f32 %v1344_v12, %v3061_v62  ;;  %v854_v9 = vsel %vm852_vm15, %v853_v18, %v851_v13 }
 0x15c   :  { %v1469_v44 = vadd.f32 %v1405_v59, %v3090_v38  ;;  %v844_v14 = vsel %vm843_vm0, %v3084_v26, %v842_v61  ;;  %v1343_v41 = vmul.f32 %v1151_v29, %v1151_v29  ;;  %v1090_v3 = vsub.f32 2.0, %v854_v9  ;;  %v3194_v26 = vpop.xlane.xlu0 %501 }
 0x15d   :  { %v847_v45 = vsel %vm845_vm1, %v846_v36, %v844_v14  ;;  %v863_v32 = vmul.f32 %v1762_v50, %v3109_v47  ;;  %v1764_v31 = vpop.eup %1763  ;;  %v1576_v4 = vsel %vm1494_vm13, %v1470_v35, 0.0  ;;  %vm880_vm7 = vcmp.eq.f32.partialorder %v3145_v22, 0.0 }
 0x15e   :  { %v1574_v38 = vsel %vm1494_vm13, %v1469_v44, 0.0  ;;  %v1089_v62 = vsub.f32 2.0, %v847_v45  ;;  %v1407_v33 = vmul.f32 %v1343_v41, %v3077_v5  ;;  %v1154_v28 = vmax.f32 %v1090_v3, 0.0  ;;  %v3248_v41 = vld [vmem:[%s3525_s2 + $0x198] sm:$0xff] }
 0x15f   :  { %v1575_v15 = vadd.f32 %v1574_v38, %v1573_v16  ;;  %v865_v56 = vsel %vm864_vm2, %v3109_v47, %v863_v32  ;;  %v1472_v54 = vadd.f32 %v1408_v37, %v3102_v55  ;;  %v856_v6 = vmul.f32 %v1764_v31, %v3129_v43 }
 0x160   :  { %v1153_v2 = vmax.f32 %v1089_v62, 0.0  ;;  %v868_v42 = vsel %vm866_vm3, %v867_v27, %v865_v56  ;;  %v1471_v16 = vadd.f32 %v1407_v33, %v3125_v11  ;;  %v1346_v5 = vmul.f32 %v1154_v28, %v1154_v28  ;;  %v3210_v11 = vpop.xlane.xlu1 %507  ;;  %v3230_v27 = vpop.xlane.xlu0 %505 }
 0x161   :  { %v1766_v24 = vpop.eup %1765  ;;  %v1577_v25 = vadd.f32 %v1576_v4, %v1575_v15  ;;  %v1092_v18 = vsub.f32 2.0, %v868_v42  ;;  %v858_v48 = vsel %vm857_vm4, %v3129_v43, %v856_v6  ;;  %1767 = vrsqrt.f32 %v3194_v26 }
 0x162   :  { %v1345_v30 = vmul.f32 %v1153_v2, %v1153_v2  ;;  %v877_v51 = vmul.f32 %v1766_v24, %v3145_v22  ;;  %v1578_v55 = vsel %vm1494_vm13, %v1471_v16, 0.0  ;;  %v861_v34 = vsel %vm859_vm5, %v860_v20, %v858_v48 }
 0x163   :  { %v1156_v23 = vmax.f32 %v1092_v18, 0.0  ;;  %v881_v21 = vand.u32 2147483648, %v3145_v22  ;;  %v1579_v57 = vadd.f32 %v1578_v55, %v1577_v25  ;;  %v1091_v7 = vsub.f32 2.0, %v861_v34  ;;  %v3280_v18 = vld [vmem:[%s3525_s2 + $0x1a8] sm:$0xff] }
 0x164   :  { %v1409_v58 = vmul.f32 %v1345_v30, %v3121_v10  ;;  %v879_v36 = vsel %vm878_vm6, %v3145_v22, %v877_v51  ;;  %v1410_v60 = vmul.f32 %v1346_v5, %v3107_v0  ;;  %v1030_v10 = vld [vmem:[%s3525_s2 + $0x188] sm:$0xff]  ;;  %v1580_v49 = vsel %vm1494_vm13, %v1472_v54, 0.0  ;;  %v3241_v37 = vpop.xlane.xlu1 %511  ;;  %v3254_v4 = vpop.xlane.xlu0 %509 }
 0x165   :  { %v1348_v53 = vmul.f32 %v1156_v23, %v1156_v23  ;;  %v882_v40 = vsel %vm880_vm7, %v881_v21, %v879_v36  ;;  %v1155_v39 = vmax.f32 %v1091_v7, 0.0  ;;  %v1282_v35 = vmul.f32 %v1218_v63, %v3067_v52  ;;  %v3302_v36 = vld [vmem:[%s3525_s2 + $0x1a0] sm:$0xff] }
 0x166   :  { %v1473_v8 = vadd.f32 %v1409_v58, %v3158_v1  ;;  %v1094_v17 = vsub.f32 2.0, %v882_v40  ;;  %v1581_v59 = vadd.f32 %v1580_v49, %v1579_v57  ;;  %v1220_v12 = vsub.f32 1.0, %v1028_v46  ;;  %v3238_v1 = vld [vmem:[%s3525_s2 + $0x180] sm:$0xff] }
 0x167   :  { %v1219_v61 = vsub.f32 1.0, %v1027_v19  ;;  %v1347_v50 = vmul.f32 %v1155_v39, %v1155_v39  ;;  %v1222_v29 = vsub.f32 1.0, %v1030_v10  ;;  %v1474_v20 = vadd.f32 %v1410_v60, %v1282_v35 }
 0x168   :  { %v1158_v13 = vmax.f32 %v1094_v17, 0.0  ;;  %v1412_v44 = vmul.f32 %v1348_v53, %v1028_v46  ;;  %1769 = vrsqrt.f32 %v3210_v11  ;;  %v1582_v0 = vsel %vm1494_vm13, %v1473_v8, 0.0  ;;  %v3269_v2 = vpop.xlane.xlu1 %515  ;;  %v3287_v51 = vpop.xlane.xlu0 %513 }
 0x169   :  { %v1411_v52 = vmul.f32 %v1347_v50, %v1027_v19  ;;  %v1583_v9 = vadd.f32 %v1582_v0, %v1581_v59  ;;  %v1284_v14 = vmul.f32 %v1220_v12, %v3109_v47  ;;  %v1283_v45 = vmul.f32 %v1219_v61, %v3129_v43 }
 0x16a   :  { %v1350_v63 = vmul.f32 %v1158_v13, %v1158_v13  ;;  %v1286_v32 = vmul.f32 %v1222_v29, %v3145_v22  ;;  %v1221_v31 = vsub.f32 1.0, %v3238_v1  ;;  %1771 = vrsqrt.f32 %v3230_v27  ;;  %v3264_v22 = vld [vmem:[%s3525_s2 + $0x190] sm:$0xff] }
 0x16b   :  { %v1768_v3 = vpop.eup %1767  ;;  %v1584_v38 = vsel %vm1494_vm13, %v1474_v20, 0.0  ;;  %v1476_v62 = vadd.f32 %v1412_v44, %v1284_v14  ;;  %vm871_vm8 = vcmp.eq.f32.partialorder %v3194_v26, inf  ;;  %v1475_v15 = vadd.f32 %v1411_v52, %v1283_v45 }
 0x16c   :  { %v870_v47 = vmul.f32 %v1768_v3, %v3194_v26  ;;  %v1414_v33 = vmul.f32 %v1350_v63, %v1030_v10  ;;  %v874_v28 = vand.u32 2147483648, %v3194_v26  ;;  %v1224_v43 = vsub.f32 1.0, %v3248_v41  ;;  %v3305_v60 = vpop.xlane.xlu1 %519  ;;  %v3322_v61 = vpop.xlane.xlu0 %517 }
 0x16d   :  { %v1585_v56 = vadd.f32 %v1584_v38, %v1583_v9  ;;  %vm873_vm9 = vcmp.eq.f32.partialorder %v3194_v26, 0.0  ;;  %1773 = vrsqrt.f32 %v3241_v37  ;;  %v1285_v6 = vmul.f32 %v1221_v31, %v3194_v26 }
 0x16e   :  { %v872_v54 = vsel %vm871_vm8, %v3194_v26, %v870_v47  ;;  %vm892_vm10 = vcmp.eq.f32.partialorder %v3210_v11, inf  ;;  %vm894_vm11 = vcmp.eq.f32.partialorder %v3210_v11, 0.0  ;;  %v1588_v24 = vsel %vm1494_vm13, %v1476_v62, 0.0 }
 0x16f   :  { %v875_v42 = vsel %vm873_vm9, %v874_v28, %v872_v54  ;;  %v895_v16 = vand.u32 2147483648, %v3210_v11  ;;  %v1223_v5 = vsub.f32 1.0, %v3264_v22  ;;  %v1586_v30 = vsel %vm1494_vm13, %v1475_v15, 0.0 }
 0x170   :  { %v1093_v25 = vsub.f32 2.0, %v875_v42  ;;  %v1478_v48 = vadd.f32 %v1414_v33, %v1286_v32  ;;  %v3284_v26 = vmul.f32 %v1224_v43, %v3210_v11  ;;  %1775 = vrsqrt.f32 %v3254_v4 }
 0x171   :  { %v1587_v23 = vadd.f32 %v1586_v30, %v1585_v56  ;;  %vm885_vm12 = vcmp.eq.f32.partialorder %v3230_v27, inf  ;;  %1777 = vrsqrt.f32 %v3269_v2  ;;  %vm887_vm14 = vcmp.eq.f32.partialorder %v3230_v27, 0.0 }
 0x172   :  { %v1770_v55 = vpop.eup %1769  ;;  %v1157_v34 = vmax.f32 %v1093_v25, 0.0  ;;  %v888_v57 = vand.u32 2147483648, %v3230_v27  ;;  %v1226_v58 = vsub.f32 1.0, %v3280_v18  ;;  %v3296_v7 = vmul.f32 %v1223_v5, %v3230_v27  ;;  %v3362_v5 = vpop.xlane.xlu1 %523 }
 0x173   :  { %v891_v21 = vmul.f32 %v1770_v55, %v3210_v11  ;;  %vm906_vm15 = vcmp.eq.f32.partialorder %v3241_v37, inf  ;;  %1779 = vrsqrt.f32 %v3287_v51  ;;  %v1592_v19 = vsel %vm1494_vm13, %v1478_v48, 0.0 }
 0x174   :  { %v1349_v46 = vmul.f32 %v1157_v34, %v1157_v34  ;;  %v1772_v53 = vpop.eup %1771  ;;  %vm908_vm0 = vcmp.eq.f32.partialorder %v3241_v37, 0.0  ;;  %v909_v40 = vand.u32 2147483648, %v3241_v37  ;;  %v1589_v49 = vadd.f32 %v1588_v24, %v1587_v23 }
 0x175   :  { %v893_v10 = vsel %vm892_vm10, %v3210_v11, %v891_v21  ;;  %v884_v17 = vmul.f32 %v1772_v53, %v3230_v27  ;;  %v3318_v59 = vmul.f32 %v1226_v58, %v3241_v37  ;;  %v1225_v12 = vsub.f32 1.0, %v3302_v36 }
 0x176   :  { %v1413_v8 = vmul.f32 %v1349_v46, %v3238_v1  ;;  %v896_v39 = vsel %vm894_vm11, %v895_v16, %v893_v10  ;;  %1781 = vrsqrt.f32 %v3305_v60  ;;  %vm899_vm1 = vcmp.eq.f32.partialorder %v3254_v4, inf }
 0x177   :  { %v1096_v35 = vsub.f32 2.0, %v896_v39  ;;  %v1774_v50 = vpop.eup %1773  ;;  %v886_v13 = vsel %vm885_vm12, %v3230_v27, %v884_v17  ;;  %vm901_vm2 = vcmp.eq.f32.partialorder %v3254_v4, 0.0  ;;  %v902_v1 = vand.u32 2147483648, %v3254_v4 }
 0x178   :  { %v1477_v29 = vadd.f32 %v1413_v8, %v1285_v6  ;;  %v889_v20 = vsel %vm887_vm14, %v888_v57, %v886_v13  ;;  %v905_v44 = vmul.f32 %v1774_v50, %v3241_v37  ;;  %vm920_vm3 = vcmp.eq.f32.partialorder %v3269_v2, inf  ;;  %v1035_v50 = vld [vmem:[%s3525_s2 + $0x1b0] sm:$0xff] }
 0x179   :  { %v1160_v11 = vmax.f32 %v1096_v35, 0.0  ;;  %v1095_v0 = vsub.f32 2.0, %v889_v20  ;;  %vm922_vm4 = vcmp.eq.f32.partialorder %v3269_v2, 0.0  ;;  %1783 = vrsqrt.f32 %v3322_v61  ;;  %v1036_v35 = vld [vmem:[%s3525_s2 + $0x1b8] sm:$0xff] }
 0x17a   :  { %v1776_v52 = vpop.eup %1775  ;;  %v907_v9 = vsel %vm906_vm15, %v3241_v37, %v905_v44  ;;  %v923_v27 = vand.u32 2147483648, %v3269_v2  ;;  %vm913_vm5 = vcmp.eq.f32.partialorder %v3287_v51, inf  ;;  %v1590_v3 = vsel %vm1494_vm13, %v1477_v29, 0.0 }
 0x17b   :  { %v1352_v63 = vmul.f32 %v1160_v11, %v1160_v11  ;;  %v1778_v14 = vpop.eup %1777  ;;  %v1159_v45 = vmax.f32 %v1095_v0, 0.0  ;;  %v910_v32 = vsel %vm908_vm0, %v909_v40, %v907_v9  ;;  %v898_v31 = vmul.f32 %v1776_v52, %v3254_v4  ;;  %v3398_v0 = vpop.xlane.xlu0 %521 }
 0x17c   :  { %v1591_v38 = vadd.f32 %v1590_v3, %v1589_v49  ;;  %v1098_v62 = vsub.f32 2.0, %v910_v32  ;;  %v919_v47 = vmul.f32 %v1778_v14, %v3269_v2  ;;  %vm915_vm6 = vcmp.eq.f32.partialorder %v3287_v51, 0.0  ;;  %v1038_v32 = vld [vmem:[%s3525_s2 + $0x1c8] sm:$0xff] }
 0x17d   :  { %v1780_v15 = vpop.eup %1779  ;;  %v1351_v33 = vmul.f32 %v1159_v45, %v1159_v45  ;;  %v900_v28 = vsel %vm899_vm1, %v3254_v4, %v898_v31  ;;  %v916_v43 = vand.u32 2147483648, %v3287_v51  ;;  %vm934_vm7 = vcmp.eq.f32.partialorder %v3305_v60, inf }
 0x17e   :  { %v1416_v37 = vmul.f32 %v1352_v63, %v3248_v41  ;;  %v1162_v56 = vmax.f32 %v1098_v62, 0.0  ;;  %v903_v54 = vsel %vm901_vm2, %v902_v1, %v900_v28  ;;  %v921_v42 = vsel %vm920_vm3, %v3269_v2, %v919_v47  ;;  %v3406_v47 = vpop.xlane.xlu1 %527 }
 0x17f   :  { %v1415_v6 = vmul.f32 %v1351_v33, %v3264_v22  ;;  %v1097_v24 = vsub.f32 2.0, %v903_v54  ;;  %v924_v25 = vsel %vm922_vm4, %v923_v27, %v921_v42  ;;  %v912_v16 = vmul.f32 %v1780_v15, %v3287_v51  ;;  %v3411_v42 = vpop.xlane.xlu0 %525 }
 0x180   :  { %v1782_v30 = vpop.eup %1781  ;;  %v1593_v41 = vadd.f32 %v1592_v19, %v1591_v38  ;;  %v1100_v48 = vsub.f32 2.0, %v924_v25  ;;  %vm936_vm8 = vcmp.eq.f32.partialorder %v3305_v60, 0.0  ;;  %v937_v55 = vand.u32 2147483648, %v3305_v60  ;;  %v3420_v25 = vld [vmem:[%s3525_s2 + $0x1d8] sm:$0xff] }
 0x181   :  { %v1479_v23 = vadd.f32 %v1415_v6, %v3296_v7  ;;  %v1161_v34 = vmax.f32 %v1097_v24, 0.0  ;;  %v914_v22 = vsel %vm913_vm5, %v3287_v51, %v912_v16  ;;  %v933_v21 = vmul.f32 %v1782_v30, %v3305_v60  ;;  %v1037_v24 = vld [vmem:[%s3525_s2 + $0x1c0] sm:$0xff] }
 0x182   :  { %v1480_v57 = vadd.f32 %v1416_v37, %v3284_v26  ;;  %v1354_v58 = vmul.f32 %v1162_v56, %v1162_v56  ;;  %v917_v46 = vsel %vm915_vm6, %v916_v43, %v914_v22  ;;  %1785 = vrsqrt.f32 %v3362_v5 }
 0x183   :  { %v1784_v53 = vpop.eup %1783  ;;  %v1594_v19 = vsel %vm1494_vm13, %v1479_v23, 0.0  ;;  %v1353_v10 = vmul.f32 %v1161_v34, %v1161_v34  ;;  %v1099_v7 = vsub.f32 2.0, %v917_v46  ;;  %v935_v40 = vsel %vm934_vm7, %v3305_v60, %v933_v21 }
 0x184   :  { %v1595_v49 = vadd.f32 %v1594_v19, %v1593_v41  ;;  %v1289_v26 = vmul.f32 %v1225_v12, %v3254_v4  ;;  %v1164_v8 = vmax.f32 %v1100_v48, 0.0  ;;  %v938_v39 = vsel %vm936_vm8, %v937_v55, %v935_v40  ;;  %v3430_v55 = vld [vmem:[%s3525_s2 + $0x1d0] sm:$0xff] }
 0x185   :  { %v1417_v17 = vmul.f32 %v1353_v10, %v3302_v36  ;;  %v1163_v29 = vmax.f32 %v1099_v7, 0.0  ;;  %v1102_v13 = vsub.f32 2.0, %v938_v39  ;;  %v926_v11 = vmul.f32 %v1784_v53, %v3322_v61  ;;  %v3439_v7 = vpop.xlane.xlu0 %529 }
 0x186   :  { %v1418_v4 = vmul.f32 %v1354_v58, %v3280_v18  ;;  %vm927_vm9 = vcmp.eq.f32.partialorder %v3322_v61, inf  ;;  %vm929_vm10 = vcmp.eq.f32.partialorder %v3322_v61, 0.0  ;;  %v930_v36 = vand.u32 2147483648, %v3322_v61 }
 0x187   :  { %v1596_v12 = vsel %vm1494_vm13, %v1480_v57, 0.0  ;;  %v1481_v20 = vadd.f32 %v1417_v17, %v1289_v26  ;;  %v1355_v44 = vmul.f32 %v1163_v29, %v1163_v29  ;;  %v928_v1 = vsel %vm927_vm9, %v3322_v61, %v926_v11  ;;  %v3433_v57 = vpop.xlane.xlu1 %531 }
 0x188   :  { %v1597_v52 = vadd.f32 %v1596_v12, %v1595_v49  ;;  %v1228_v63 = vsub.f32 1.0, %v1036_v35  ;;  %v1227_v9 = vsub.f32 1.0, %v1035_v50  ;;  %v931_v27 = vsel %vm929_vm10, %v930_v36, %v928_v1  ;;  %v3460_v36 = vld [vmem:[%s3525_s2 + $0x1e0] sm:$0xff] }
 0x189   :  { %v1356_v14 = vmul.f32 %v1164_v8, %v1164_v8  ;;  %v1166_v18 = vmax.f32 %v1102_v13, 0.0  ;;  %v1101_v3 = vsub.f32 2.0, %v931_v27  ;;  %v1482_v45 = vadd.f32 %v1418_v4, %v3318_v59 }
 0x18a   :  { %v1598_v31 = vsel %vm1494_vm13, %v1481_v20, 0.0  ;;  %v1419_v38 = vmul.f32 %v1355_v44, %v1035_v50  ;;  %1787 = vrsqrt.f32 %v3398_v0  ;;  %v1292_v28 = vmul.f32 %v1228_v63, %v3269_v2 }
 0x18b   :  { %v1165_v62 = vmax.f32 %v1101_v3, 0.0  ;;  %v1599_v33 = vadd.f32 %v1598_v31, %v1597_v52  ;;  %v1291_v43 = vmul.f32 %v1227_v9, %v3287_v51  ;;  %v1420_v37 = vmul.f32 %v1356_v14, %v1036_v35  ;;  %v3451_v35 = vld [vmem:[%s3525_s2 + $0x1e8] sm:$0xff] }
 0x18c   :  { %v1786_v15 = vpop.eup %1785  ;;  %v1230_v59 = vsub.f32 1.0, %v1038_v32  ;;  %v1358_v56 = vmul.f32 %v1166_v18, %v1166_v18  ;;  %v1600_v6 = vsel %vm1494_vm13, %v1482_v45, 0.0  ;;  %vm948_vm11 = vcmp.eq.f32.partialorder %v3362_v5, inf }
 0x18d   :  { %v947_v54 = vmul.f32 %v1786_v15, %v3362_v5  ;;  %v951_v2 = vand.u32 2147483648, %v3362_v5  ;;  %1789 = vrsqrt.f32 %v3406_v47  ;;  %v1483_v51 = vadd.f32 %v1419_v38, %v1291_v43 }
 0x18e   :  { %v1357_v16 = vmul.f32 %v1165_v62, %v1165_v62  ;;  %vm950_vm12 = vcmp.eq.f32.partialorder %v3362_v5, 0.0  ;;  %v1601_v41 = vadd.f32 %v1600_v6, %v1599_v33  ;;  %v1484_v23 = vadd.f32 %v1420_v37, %v1292_v28 }
 0x18f   :  { %v949_v30 = vsel %vm948_vm11, %v3362_v5, %v947_v54  ;;  %v1422_v34 = vmul.f32 %v1358_v56, %v1038_v32  ;;  %v1229_v22 = vsub.f32 1.0, %v1037_v24  ;;  %v1232_v21 = vsub.f32 1.0, %v3420_v25 }
 0x190   :  { %v952_v48 = vsel %vm950_vm12, %v951_v2, %v949_v30  ;;  %v1294_v58 = vmul.f32 %v1230_v59, %v3305_v60  ;;  %1791 = vrsqrt.f32 %v3411_v42  ;;  %v1602_v46 = vsel %vm1494_vm13, %v1483_v51, 0.0 }
 0x191   :  { %v1421_v53 = vmul.f32 %v1357_v16, %v1037_v24  ;;  %v1104_v19 = vsub.f32 2.0, %v952_v48  ;;  %v1231_v10 = vsub.f32 1.0, %v3430_v55  ;;  %v1603_v40 = vadd.f32 %v1602_v46, %v1601_v41 }
 0x192   :  { %1793 = vrsqrt.f32 %v3433_v57  ;;  %v1604_v26 = vsel %vm1494_vm13, %v1484_v23, 0.0  ;;  %v1486_v8 = vadd.f32 %v1422_v34, %v1294_v58  ;;  %v1293_v39 = vmul.f32 %v1229_v22, %v3322_v61 }
 0x193   :  { %v1296_v60 = vmul.f32 %v1232_v21, %v3362_v5  ;;  %vm941_vm14 = vcmp.eq.f32.partialorder %v3398_v0, inf  ;;  %vm943_vm15 = vcmp.eq.f32.partialorder %v3398_v0, 0.0  ;;  %1795 = vrsqrt.f32 %v3439_v7 }
 0x194   :  { %v1788_v49 = vpop.eup %1787  ;;  %v1485_v50 = vadd.f32 %v1421_v53, %v1293_v39  ;;  %v1168_v29 = vmax.f32 %v1104_v19, 0.0  ;;  %v944_v13 = vand.u32 2147483648, %v3398_v0  ;;  %v1295_v61 = vmul.f32 %v1231_v10, %v3398_v0 }
 0x195   :  { %v940_v17 = vmul.f32 %v1788_v49, %v3398_v0  ;;  %v1605_v11 = vadd.f32 %v1604_v26, %v1603_v40  ;;  %vm83_vm0 = vcmask 0   ;;  %v1608_v12 = vsel %vm1494_vm13, %v1486_v8, 0.0  ;;  %v1044_v49 = vld [vmem:[%s3525_s2 + $0x1f8] sm:$0xff]  ;;  %v1043_v8 = vld [vmem:[%s3525_s2 + $0x1f0] sm:$0xff]  ;;  %s1849_s2 = smov [#allocation5]  }
 0x196   :  { %v1234_v44 = vsub.f32 1.0, %v3451_v35  ;;  %v1848_v52 = vmov 0.0   ;;  %vm962_vm1 = vcmp.eq.f32.partialorder %v3406_v47, inf  ;;  %vm964_vm2 = vcmp.eq.f32.partialorder %v3406_v47, 0.0  ;;  %s1643_s25 = sshll.u32 %s1849_s2, 4  ;;  %s1644_s25 = int_to_ptr.vmem [resolvable:$true] %s1643_s25 }
 0x197   :  { %v1790_v5 = vpop.eup %1789  ;;  %v942_v4 = vsel %vm941_vm14, %v3398_v0, %v940_v17  ;;  %84 = vst.msk [vmem:[#allocation5] sm:$0x1] %vm83_vm0, %v1848_v52  ;;  %v965_v0 = vand.u32 2147483648, %v3406_v47  ;;  %v1606_v9 = vsel %vm1494_vm13, %v1485_v50, 0.0  ;;  %v1360_v27 = vmul.f32 %v1168_v29, %v1168_v29  ;;  %s1819_s26 = scalar_lea.vmem %s1644_s25, 16  ;;  %s1823_s27 = scalar_lea.vmem %s1644_s25, 32 }
 0x198   :  { %v945_v20 = vsel %vm943_vm15, %v944_v13, %v942_v4  ;;  %v961_v1 = vmul.f32 %v1790_v5, %v3406_v47  ;;  %v1233_v18 = vsub.f32 1.0, %v3460_v36  ;;  %v1607_v45 = vadd.f32 %v1606_v9, %v1605_v11  ;;  %p1820_p8 = scmp.ne.s32.totalorder %s1644_s25, %s1819_s26  ;;  %p1824_p9 = scmp.lt.s32.totalorder %s1644_s25, %s1644_s25 }
 0x199   :  { %v1103_v63 = vsub.f32 2.0, %v945_v20  ;;  %vm955_vm3 = vcmp.eq.f32.partialorder %v3411_v42, inf  ;;  %vm957_vm4 = vcmp.eq.f32.partialorder %v3411_v42, 0.0  ;;  %v958_v15 = vand.u32 2147483648, %v3411_v42  ;;  %p1825_p10 = scmp.lt.s32.totalorder %s1823_s27, %s1819_s26 }
 0x19a   :  { %v963_v14 = vsel %vm962_vm1, %v3406_v47, %v961_v1  ;;  %v1792_v3 = vpop.eup %1791  ;;  %vm976_vm5 = vcmp.eq.f32.partialorder %v3433_v57, inf  ;;  %vm978_vm6 = vcmp.eq.f32.partialorder %v3433_v57, 0.0  ;;  %v979_v43 = vand.u32 2147483648, %v3433_v57 }
 0x19b   :  { %v1167_v32 = vmax.f32 %v1103_v63, 0.0  ;;  %v966_v31 = vsel %vm964_vm2, %v965_v0, %v963_v14  ;;  %v954_v62 = vmul.f32 %v1792_v3, %v3411_v42  ;;  %v1424_v37 = vmul.f32 %v1360_v27, %v3420_v25  ;;  %p1826_p11 = por %p1825_p10, %p1824_p9 }
 0x19c   :  { %v1106_v38 = vsub.f32 2.0, %v966_v31  ;;  %v1794_v33 = vpop.eup %1793  ;;  %v1609_v24 = vadd.f32 %v1608_v12, %v1607_v45  ;;  %vm969_vm7 = vcmp.eq.f32.partialorder %v3439_v7, inf  ;;  %vm971_vm8 = vcmp.eq.f32.partialorder %v3439_v7, 0.0 }
 0x19d   :  { %v1359_v28 = vmul.f32 %v1167_v32, %v1167_v32  ;;  %v956_v56 = vsel %vm955_vm3, %v3411_v42, %v954_v62  ;;  %v975_v54 = vmul.f32 %v1794_v33, %v3433_v57  ;;  %v1796_v6 = vpop.eup %1795  ;;  %v972_v34 = vand.u32 2147483648, %v3439_v7  ;;  %p1827_p12 = pnand %p1826_p11, %p1820_p8 }
 0x19e   :  { %v1170_v59 = vmax.f32 %v1106_v38, 0.0  ;;  %v959_v51 = vsel %vm957_vm4, %v958_v15, %v956_v56  ;;  %v968_v48 = vmul.f32 %v1796_v6, %v3439_v7  ;;  %v1488_v22 = vadd.f32 %v1424_v37, %v1296_v60 }
 0x19f   :  { %v1423_v2 = vmul.f32 %v1359_v28, %v3430_v55  ;;  %v1105_v30 = vsub.f32 2.0, %v959_v51  ;;  %v977_v41 = vsel %vm976_vm5, %v3433_v57, %v975_v54  ;;  %v1298_v39 = vmul.f32 %v1234_v44, %v3406_v47 }
 0x1a0   :  { %v1362_v16 = vmul.f32 %v1170_v59, %v1170_v59  ;;  %v980_v25 = vsel %vm978_vm6, %v979_v43, %v977_v41  ;;  %v970_v58 = vsel %vm969_vm7, %v3439_v7, %v968_v48  ;;  %v1612_v17 = vsel %vm1494_vm13, %v1488_v22, 0.0 }
 0x1a1   :  { %v1487_v23 = vadd.f32 %v1423_v2, %v1295_v61  ;;  %v1169_v21 = vmax.f32 %v1105_v30, 0.0  ;;  %v1108_v55 = vsub.f32 2.0, %v980_v25  ;;  %v973_v53 = vsel %vm971_vm8, %v972_v34, %v970_v58 }
 0x1a2   :  { %v1426_v10 = vmul.f32 %v1362_v16, %v3451_v35  ;;  %v1107_v60 = vsub.f32 2.0, %v973_v53  ;;  %v1297_v50 = vmul.f32 %v1233_v18, %v3411_v42  ;;  %v1236_v61 = vsub.f32 1.0, %v1044_v49 }
 0x1a3   :  { %v1610_v46 = vsel %vm1494_vm13, %v1487_v23, 0.0  ;;  %v1361_v40 = vmul.f32 %v1169_v21, %v1169_v21  ;;  %v1172_v26 = vmax.f32 %v1108_v55, 0.0  ;;  %v1235_v5 = vsub.f32 1.0, %v1043_v8 }
 0x1a4   :  { %v1611_v19 = vadd.f32 %v1610_v46, %v1609_v24  ;;  %v1171_v11 = vmax.f32 %v1107_v60, 0.0  ;;  %v1490_v4 = vadd.f32 %v1426_v10, %v1298_v39  ;;  %v1300_v47 = vmul.f32 %v1236_v61, %v3433_v57  ;;  %v1493_v57 = vld [vmem:[#allocation5] sm:$0x1] }
 0x1a5   :  { %v1425_v29 = vmul.f32 %v1361_v40, %v3460_v36  ;;  %v1364_v35 = vmul.f32 %v1172_v26, %v1172_v26  ;;  %v1299_v44 = vmul.f32 %v1235_v5, %v3439_v7 }
 0x1a6   :  { %v1613_v13 = vadd.f32 %v1612_v17, %v1611_v19  ;;  %v1363_v1 = vmul.f32 %v1171_v11, %v1171_v11  ;;  %v1616_v42 = vsel %vm1494_vm13, %v1490_v4, 0.0 }
 0x1a7   :  { %v1489_v12 = vadd.f32 %v1425_v29, %v1297_v50  ;;  %v1428_v20 = vmul.f32 %v1364_v35, %v1044_v49 }
 0x1a8   :  { %v1427_v0 = vmul.f32 %v1363_v1, %v1043_v8 }
 0x1a9   :  { %v1614_v52 = vsel %vm1494_vm13, %v1489_v12, 0.0  ;;  %v1492_v36 = vadd.f32 %v1428_v20, %v1300_v47 }
 0x1aa   :  { %v1615_v63 = vadd.f32 %v1614_v52, %v1613_v13  ;;  %v1491_v27 = vadd.f32 %v1427_v0, %v1299_v44 }
 0x1ab   :  { %v1620_v3 = vsel %vm1494_vm13, %v1492_v36, 0.0 }
 0x1ac   :  { %v1617_v9 = vadd.f32 %v1616_v42, %v1615_v63  ;;  %v1618_v14 = vsel %vm1494_vm13, %v1491_v27, 0.0 }
 0x1ae   :  { %v1619_v18 = vadd.f32 %v1618_v14, %v1617_v9 }
 0x1b0   :  { %v1621_v45 = vadd.f32 %v1620_v3, %v1619_v18 }
 0x1b2   :  { %v1622_v32 = vrot.slane %v1621_v45, 4 }
 0x1b4   :  { %v1623_v31 = vadd.f32 %v1622_v32, %v1621_v45 }
 0x1b6   :  { %v1624_v38 = vrot.slane %v1623_v31, 2 }
 0x1b8   :  { %v1625_v62 = vadd.f32 %v1624_v38, %v1623_v31 }
 0x1ba   :  { %v1626_v15 = vrot.slane %v1625_v62, 1 }
 0x1bc   :  { %v1627_v33 = vadd.f32 %v1626_v15, %v1625_v62 }
 0x1be   :  { %v1628_v7 = vadd.f32 %v1627_v33, %v1493_v57 }
 0x1c0   :  { %1630 = vst.msk [vmem:[#allocation5] sm:$0x1] %vm83_vm0, %v1628_v7 }
 0x1c7   :  { %v1634_v28 = vld [vmem:[#allocation5] sm:$0x1] }
 0x1c8   :  { %v1635_v43 = vmul.f32 0.001953125, %v1634_v28 }
 0x1ca   :  { %1636 = vst.msk [vmem:[#allocation5] sm:$0x1] %vm83_vm0, %v1635_v43 }
 0x1cb   :  { %1830 = shalt.err (!%p1827_p12)
}
 0x1cc   :  { %s1831_s30 = scalar_lea.hbm %s3526_s3, 16 }
 0x1cd   :  { %p1832_p13 = scmp.ne.s32.totalorder %s3526_s3, %s1831_s30  ;;  %p1835_p0 = scmp.lt.u32.totalorder %s1831_s30, %s3526_s3 }
 0x1cf   :  { %p1837_p1 = pnand %p1835_p0, %p1832_p13 }
 0x1d1   :  { %1840 = shalt.err (!%p1837_p1)
}
 0x1d2   :  { %1646 = dma.vmem_to_hbm [thread:$0]  %s1644_s25, 16, %s3526_s3, [#allocation4]  }
 0x1d3   :  { %1843 = dma.done.wait [#allocation4], 16  }
 0x1d4   :  { %1844 = vsyncadd [#allocation4], 4294967280 }
 0x1d5   :  { %1650 = vsyncpa [#allocation3], 1 }
 0x1d6   :  { %1651 = vsyncpa [#allocation4], 1 }

</bundles_post_ra>
